<compile_context>
chip_gen: v5e
topology: v5e:2x2
jax: 0.10.0
libtpu: 0.0.40
codegen_flags: <defaults>
</compile_context>

<pallas_src>
import functools

import jax
import jax.numpy as jnp
from jax.experimental import pallas as pl
from jax.experimental.pallas import tpu as pltpu


def _mlp_kernel(n_layers, x_ref, *refs):
    # refs = (w0, b0, w1, b1, ..., w{L-1}, b{L-1}, out_ref)
    out_ref = refs[-1]
    param_refs = refs[:-1]

    h = x_ref[...].astype(jnp.float32)
    for li in range(n_layers):
        w = param_refs[2 * li][...]            # bf16 [in, out] (MXU operand)
        b = param_refs[2 * li + 1][...]        # f32  [1, out]
        h = jnp.dot(h.astype(jnp.bfloat16), w,
                    preferred_element_type=jnp.float32) + b
        if li < n_layers - 1:
            h = jnp.maximum(h, 0.2 * h)        # nn.LeakyReLU(0.2)
        else:
            h = jax.nn.sigmoid(h)              # final nn.Sigmoid()
    out_ref[...] = h.astype(out_ref.dtype)


def mlp_forward(x, weights, biases, *, block_b=512):
    """Run the full Fc stack in one pallas_call, tiled over the batch.

    No host-side padding/slicing: the last batch tile may overhang the array
    (reads don't-care rows, writes masked).  Safe because every op is
    row-independent (matmul over features + elementwise).
    """
    n_layers = len(weights)
    batch, in_f = x.shape
    out_f = weights[-1].shape[1]

    # ---- batch tile: one full-array tile when the batch fits, else block_b
    #      rows per step (block_b divisible by 8 -> legal second-to-last dim).
    #      For v7x megacore, large training batches (>= 2*block_b) naturally
    #      give an even-ish step count; for small batches one TC is fine.
    tile_b = batch if batch <= block_b else block_b
    grid = (pl.cdiv(batch, tile_b),)

    # ---- parameters: bf16 weights (halve weight DMA, native MXU operands),
    #      f32 2-D biases.  All tiny -> full-block resident (constant index_map).
    params, param_specs = [], []
    for w, b in zip(weights, biases):
        wb = w.astype(jnp.bfloat16)
        b2 = b.astype(jnp.float32).reshape(1, -1)
        params.extend([wb, b2])
        param_specs.append(pl.BlockSpec(wb.shape, lambda i: (0, 0)))
        param_specs.append(pl.BlockSpec(b2.shape, lambda i: (0, 0)))

    in_specs = [pl.BlockSpec((tile_b, in_f), lambda i: (i, 0))] + param_specs
    # Lane width = out_f (8): block last dim equals full array dim -> legal;
    # masked narrow store beats 16x padded writeback + an extra slice kernel.
    out_specs = pl.BlockSpec((tile_b, out_f), lambda i: (i, 0))

    flops = 2 * batch * sum(int(w.shape[0]) * int(w.shape[1]) for w in weights)
    bytes_accessed = (x.size * x.dtype.itemsize
                      + sum(p.size * p.dtype.itemsize for p in params)
                      + batch * out_f * 4)
    cost = pl.CostEstimate(flops=flops,
                           transcendentals=batch * out_f,   # sigmoid exp
                           bytes_accessed=bytes_accessed)

    kernel = functools.partial(_mlp_kernel, n_layers)
    return pl.pallas_call(
        kernel,
        grid=grid,
        in_specs=in_specs,
        out_specs=out_specs,
        out_shape=jax.ShapeDtypeStruct((batch, out_f), jnp.float32),
        compiler_params=pltpu.CompilerParams(
            dimension_semantics=("parallel",),  # megacore-shard batch steps (v7x)
        ),
        cost_estimate=cost,
    )(x, *params)


def build_model_params(key, input_size, output_size, nf, hidden_layers, type_2=False):
    """Reproduce the layer-size schedule of the PyTorch `Fc` module and
    deterministically initialize Linear params (PyTorch-style U(-1/sqrt(in), 1/sqrt(in)))."""
    import numpy as np

    sizes = [(input_size, nf)]
    f_mult = 1
    prev_f_mult = 1
    for i in range(hidden_layers - 1):
        prev_f_mult = f_mult
        if i >= np.floor(hidden_layers / 2) and type_2:
            f_mult = 2 ** int(np.log2(prev_f_mult) - 1)
        else:
            f_mult = 2 ** (i + 1)
        sizes.append((nf * prev_f_mult, nf * f_mult))
    sizes.append((nf * f_mult, output_size))  # final layer (Sigmoid)

    weights, biases = [], []
    for fan_in, fan_out in sizes:
        key, kw, kb = jax.random.split(key, 3)
        bound = 1.0 / (fan_in ** 0.5)
        # stored as [in, out] for the kernel (transpose of PyTorch layout)
        weights.append(jax.random.uniform(kw, (fan_in, fan_out), jnp.float32, -bound, bound))
        biases.append(jax.random.uniform(kb, (fan_out,), jnp.float32, -bound, bound))
    return weights, biases


def reference_forward(x, weights, biases):
    """Pure-JAX reference with the same bf16-operand / f32-accumulate numerics."""
    h = x.astype(jnp.float32)
    n = len(weights)
    for i, (w, b) in enumerate(zip(weights, biases)):
        h = jnp.dot(h.astype(jnp.bfloat16), w.astype(jnp.bfloat16),
                    preferred_element_type=jnp.float32) + b.astype(jnp.float32)
        if i < n - 1:
            h = jnp.maximum(h, 0.2 * h)
        else:
            h = jax.nn.sigmoid(h)
    return h


if __name__ == "__main__":
    # Model(input_size=32, output_size=8, model_type='Type_1', nf=16, hidden_layers=3)
    input_size, output_size, nf, hidden_layers = 32, 8, 16, 3
    batch = 200  # not a multiple of 8*128 tiling: exercises full-array batch tile

    key = jax.random.PRNGKey(0)
    key, kx = jax.random.split(key)
    x = jax.random.normal(kx, (batch, input_size), jnp.float32)

    weights, biases = build_model_params(
        key, input_size, output_size, nf, hidden_layers, type_2=False
    )

    ref = reference_forward(x, weights, biases)

    # Default path: single 200-row tile, grid=(1,).
    fwd = jax.jit(mlp_forward)
    out = jax.block_until_ready(fwd(x, weights, biases))
    assert out.shape == (batch, output_size)
    assert jnp.allclose(out, ref, atol=2e-3, rtol=2e-3), (
        f"mismatch vs reference: max abs err {jnp.max(jnp.abs(out - ref))}"
    )

    # Multi-step path with a non-divisible last block (128-row tiles, grid=(2,)):
    # verifies that overhang reads/masked writes are handled correctly.
    fwd_tiled = jax.jit(functools.partial(mlp_forward, block_b=128))
    out2 = jax.block_until_ready(fwd_tiled(x, weights, biases))
    assert out2.shape == (batch, output_size)
    assert jnp.allclose(out2, ref, atol=2e-3, rtol=2e-3), (
        f"tiled-path mismatch vs reference: max abs err {jnp.max(jnp.abs(out2 - ref))}"
    )

    print("KERNEL_OK")
</pallas_src>

<mosaic_0001>
module attributes {stable_mosaic.version = 11 : i64} {
  func.func @_mlp_kernel(%arg0: i32, %arg1: memref<200x32xf32, #tpu.memory_space<vmem>>, %arg2: memref<32x16xbf16, #tpu.memory_space<vmem>>, %arg3: memref<1x16xf32, #tpu.memory_space<vmem>>, %arg4: memref<16x32xbf16, #tpu.memory_space<vmem>>, %arg5: memref<1x32xf32, #tpu.memory_space<vmem>>, %arg6: memref<32x64xbf16, #tpu.memory_space<vmem>>, %arg7: memref<1x64xf32, #tpu.memory_space<vmem>>, %arg8: memref<64x8xbf16, #tpu.memory_space<vmem>>, %arg9: memref<1x8xf32, #tpu.memory_space<vmem>>, %arg10: memref<200x8xf32, #tpu.memory_space<vmem>>) attributes {dimension_semantics = [#tpu.dimension_semantics<parallel>], iteration_bounds = array<i64: 1>, scalar_prefetch = 0 : i64, scratch_operands = 0 : i64, tpu.core_type = #tpu.core_type<tc>, window_params = [{transform_indices = @transform_0, window_bounds = array<i64: 200, 32>}, {pipeline_mode = #tpu.pipeline_mode<synchronous>, transform_indices = @transform_1, window_bounds = array<i64: 32, 16>}, {pipeline_mode = #tpu.pipeline_mode<synchronous>, transform_indices = @transform_2, window_bounds = array<i64: 1, 16>}, {pipeline_mode = #tpu.pipeline_mode<synchronous>, transform_indices = @transform_3, window_bounds = array<i64: 16, 32>}, {pipeline_mode = #tpu.pipeline_mode<synchronous>, transform_indices = @transform_4, window_bounds = array<i64: 1, 32>}, {pipeline_mode = #tpu.pipeline_mode<synchronous>, transform_indices = @transform_5, window_bounds = array<i64: 32, 64>}, {pipeline_mode = #tpu.pipeline_mode<synchronous>, transform_indices = @transform_6, window_bounds = array<i64: 1, 64>}, {pipeline_mode = #tpu.pipeline_mode<synchronous>, transform_indices = @transform_7, window_bounds = array<i64: 64, 8>}, {pipeline_mode = #tpu.pipeline_mode<synchronous>, transform_indices = @transform_8, window_bounds = array<i64: 1, 8>}, {transform_indices = @transform_9, window_bounds = array<i64: 200, 8>}]} {
    %c0 = arith.constant 0 : index
    %c0_0 = arith.constant 0 : index
    %0 = vector.load %arg1[%c0, %c0_0] : memref<200x32xf32, #tpu.memory_space<vmem>>, vector<200x32xf32>
    %c0_1 = arith.constant 0 : index
    %c0_2 = arith.constant 0 : index
    %1 = vector.load %arg2[%c0_1, %c0_2] : memref<32x16xbf16, #tpu.memory_space<vmem>>, vector<32x16xbf16>
    %c0_3 = arith.constant 0 : index
    %c0_4 = arith.constant 0 : index
    %2 = vector.load %arg3[%c0_3, %c0_4] : memref<1x16xf32, #tpu.memory_space<vmem>>, vector<1x16xf32>
    %3 = arith.truncf %0 : vector<200x32xf32> to vector<200x32xbf16>
    %cst = arith.constant dense<0.000000e+00> : vector<200x16xf32>
    %4 = tpu.matmul %3, %1, %cst {dimension_numbers = #tpu.dot_dimension_numbers<[1], [0], [0], [1], [0, 0, 1, 1], [], []>} : vector<200x32xbf16>, vector<32x16xbf16>, vector<200x16xf32> -> vector<200x16xf32>
    %5 = vector.broadcast %2 : vector<1x16xf32> to vector<200x16xf32>
    %6 = arith.addf %4, %5 : vector<200x16xf32>
    %cst_5 = arith.constant 2.000000e-01 : f32
    %7 = vector.broadcast %cst_5 : f32 to vector<200x16xf32>
    %8 = arith.mulf %7, %6 : vector<200x16xf32>
    %9 = arith.maximumf %6, %8 : vector<200x16xf32>
    %c0_6 = arith.constant 0 : index
    %c0_7 = arith.constant 0 : index
    %10 = vector.load %arg4[%c0_6, %c0_7] : memref<16x32xbf16, #tpu.memory_space<vmem>>, vector<16x32xbf16>
    %c0_8 = arith.constant 0 : index
    %c0_9 = arith.constant 0 : index
    %11 = vector.load %arg5[%c0_8, %c0_9] : memref<1x32xf32, #tpu.memory_space<vmem>>, vector<1x32xf32>
    %12 = arith.truncf %9 : vector<200x16xf32> to vector<200x16xbf16>
    %cst_10 = arith.constant dense<0.000000e+00> : vector<200x32xf32>
    %13 = tpu.matmul %12, %10, %cst_10 {dimension_numbers = #tpu.dot_dimension_numbers<[1], [0], [0], [1], [0, 0, 1, 1], [], []>} : vector<200x16xbf16>, vector<16x32xbf16>, vector<200x32xf32> -> vector<200x32xf32>
    %14 = vector.broadcast %11 : vector<1x32xf32> to vector<200x32xf32>
    %15 = arith.addf %13, %14 : vector<200x32xf32>
    %cst_11 = arith.constant 2.000000e-01 : f32
    %16 = vector.broadcast %cst_11 : f32 to vector<200x32xf32>
    %17 = arith.mulf %16, %15 : vector<200x32xf32>
    %18 = arith.maximumf %15, %17 : vector<200x32xf32>
    %c0_12 = arith.constant 0 : index
    %c0_13 = arith.constant 0 : index
    %19 = vector.load %arg6[%c0_12, %c0_13] : memref<32x64xbf16, #tpu.memory_space<vmem>>, vector<32x64xbf16>
    %c0_14 = arith.constant 0 : index
    %c0_15 = arith.constant 0 : index
    %20 = vector.load %arg7[%c0_14, %c0_15] : memref<1x64xf32, #tpu.memory_space<vmem>>, vector<1x64xf32>
    %21 = arith.truncf %18 : vector<200x32xf32> to vector<200x32xbf16>
    %cst_16 = arith.constant dense<0.000000e+00> : vector<200x64xf32>
    %22 = tpu.matmul %21, %19, %cst_16 {dimension_numbers = #tpu.dot_dimension_numbers<[1], [0], [0], [1], [0, 0, 1, 1], [], []>} : vector<200x32xbf16>, vector<32x64xbf16>, vector<200x64xf32> -> vector<200x64xf32>
    %23 = vector.broadcast %20 : vector<1x64xf32> to vector<200x64xf32>
    %24 = arith.addf %22, %23 : vector<200x64xf32>
    %cst_17 = arith.constant 2.000000e-01 : f32
    %25 = vector.broadcast %cst_17 : f32 to vector<200x64xf32>
    %26 = arith.mulf %25, %24 : vector<200x64xf32>
    %27 = arith.maximumf %24, %26 : vector<200x64xf32>
    %c0_18 = arith.constant 0 : index
    %c0_19 = arith.constant 0 : index
    %28 = vector.load %arg8[%c0_18, %c0_19] : memref<64x8xbf16, #tpu.memory_space<vmem>>, vector<64x8xbf16>
    %c0_20 = arith.constant 0 : index
    %c0_21 = arith.constant 0 : index
    %29 = vector.load %arg9[%c0_20, %c0_21] : memref<1x8xf32, #tpu.memory_space<vmem>>, vector<1x8xf32>
    %30 = arith.truncf %27 : vector<200x64xf32> to vector<200x64xbf16>
    %cst_22 = arith.constant dense<0.000000e+00> : vector<200x8xf32>
    %31 = tpu.matmul %30, %28, %cst_22 {dimension_numbers = #tpu.dot_dimension_numbers<[1], [0], [0], [1], [0, 0, 1, 1], [], []>} : vector<200x64xbf16>, vector<64x8xbf16>, vector<200x8xf32> -> vector<200x8xf32>
    %32 = vector.broadcast %29 : vector<1x8xf32> to vector<200x8xf32>
    %33 = arith.addf %31, %32 : vector<200x8xf32>
    %34 = arith.negf %33 : vector<200x8xf32>
    %35 = math.exp %34 : vector<200x8xf32>
    %cst_23 = arith.constant 1.000000e+00 : f32
    %36 = vector.broadcast %cst_23 : f32 to vector<200x8xf32>
    %37 = arith.addf %36, %35 : vector<200x8xf32>
    %38 = arith.divf %36, %37 : vector<200x8xf32>
    %c0_24 = arith.constant 0 : index
    %c0_25 = arith.constant 0 : index
    %39 = vector.load %arg10[%c0_24, %c0_25] : memref<200x8xf32, #tpu.memory_space<vmem>>, vector<200x8xf32>
    tpu.vector_store %arg10[%c0_24, %c0_25], %38 {strides = array<i32>} : memref<200x8xf32, #tpu.memory_space<vmem>>, vector<200x8xf32>,
    return
  }
  func.func @transform_0(%arg0: i32) -> (i32, i32) {
    %c0_i32 = arith.constant 0 : i32
    %c0_i32_0 = arith.constant 0 : i32
    return %arg0, %c0_i32 : i32, i32
  }
  func.func @transform_1(%arg0: i32) -> (i32, i32) {
    %c0_i32 = arith.constant 0 : i32
    %c0_i32_0 = arith.constant 0 : i32
    %c0_i32_1 = arith.constant 0 : i32
    return %c0_i32, %c0_i32_0 : i32, i32
  }
  func.func @transform_2(%arg0: i32) -> (i32, i32) {
    %c0_i32 = arith.constant 0 : i32
    %c0_i32_0 = arith.constant 0 : i32
    %c0_i32_1 = arith.constant 0 : i32
    return %c0_i32, %c0_i32_0 : i32, i32
  }
  func.func @transform_3(%arg0: i32) -> (i32, i32) {
    %c0_i32 = arith.constant 0 : i32
    %c0_i32_0 = arith.constant 0 : i32
    %c0_i32_1 = arith.constant 0 : i32
    return %c0_i32, %c0_i32_0 : i32, i32
  }
  func.func @transform_4(%arg0: i32) -> (i32, i32) {
    %c0_i32 = arith.constant 0 : i32
    %c0_i32_0 = arith.constant 0 : i32
    %c0_i32_1 = arith.constant 0 : i32
    return %c0_i32, %c0_i32_0 : i32, i32
  }
  func.func @transform_5(%arg0: i32) -> (i32, i32) {
    %c0_i32 = arith.constant 0 : i32
    %c0_i32_0 = arith.constant 0 : i32
    %c0_i32_1 = arith.constant 0 : i32
    return %c0_i32, %c0_i32_0 : i32, i32
  }
  func.func @transform_6(%arg0: i32) -> (i32, i32) {
    %c0_i32 = arith.constant 0 : i32
    %c0_i32_0 = arith.constant 0 : i32
    %c0_i32_1 = arith.constant 0 : i32
    return %c0_i32, %c0_i32_0 : i32, i32
  }
  func.func @transform_7(%arg0: i32) -> (i32, i32) {
    %c0_i32 = arith.constant 0 : i32
    %c0_i32_0 = arith.constant 0 : i32
    %c0_i32_1 = arith.constant 0 : i32
    return %c0_i32, %c0_i32_0 : i32, i32
  }
  func.func @transform_8(%arg0: i32) -> (i32, i32) {
    %c0_i32 = arith.constant 0 : i32
    %c0_i32_0 = arith.constant 0 : i32
    %c0_i32_1 = arith.constant 0 : i32
    return %c0_i32, %c0_i32_0 : i32, i32
  }
  func.func @transform_9(%arg0: i32) -> (i32, i32) {
    %c0_i32 = arith.constant 0 : i32
    %c0_i32_0 = arith.constant 0 : i32
    return %arg0, %c0_i32 : i32, i32
  }
}

</mosaic_0001>

<bundles_post_ra>
// kernel: mlp_forward.1
= control target key start
LH: loop header
LB: loop body
LE: loop exit
PB: predicated region body
PF: predicated region fallthrough
CT: control target
= control target key end

     0   :  { %vm91_vm0 = vcmask 261120   ;;  %vm279_vm1 = vcmask 130048   ;;  %vm686_vm2 = vcmask 523264   ;;  %vm1274_vm6 = vcmask 64512   ;;  %s1956_s1 = inlined_call_operand.vmem [shape: bf16[32,16], index: 1, kind: input, shape index: {}]   ;;  %s1957_s0 = inlined_call_operand.vmem [shape: f32[200,32], index: 0, kind: input, shape index: {}]   ;;  %s1958_s2 = inlined_call_operand.vmem [shape: f32[1,16], index: 2, kind: input, shape index: {}]   ;;  %s1959_s3 = inlined_call_operand.vmem [shape: bf16[16,32], index: 3, kind: input, shape index: {}]   ;;  %s1960_s4 = inlined_call_operand.vmem [shape: f32[1,32], index: 4, kind: input, shape index: {}]   ;;  %s1961_s5 = inlined_call_operand.vmem [shape: bf16[32,64], index: 5, kind: input, shape index: {}]   ;;  %s1962_s6 = inlined_call_operand.vmem [shape: f32[1,64], index: 6, kind: input, shape index: {}]   ;;  %s1963_s7 = inlined_call_operand.vmem [shape: bf16[64,8], index: 7, kind: input, shape index: {}]   ;;  %s1964_s8 = inlined_call_operand.vmem [shape: f32[1,8], index: 8, kind: input, shape index: {}]   ;;  %s1965_s9 = inlined_call_operand.vmem [shape: f32[200,8], index: 9, kind: output, shape index: {}]  }
   0x1   :  { %v1418_v0 = vld [vmem:[%s1956_s1 + $0x8] sm:$0xff]  ;;  %v1417_v1 = vld [vmem:[%s1956_s1] sm:$0xff]  ;;  %v35_v5 = vld [vmem:[%s1957_s0 + $0x10] sm:$0xff] }
   0x2   :  { %137 = vmatpush.bf16.msra.mxu0 %v1418_v0  ;;  %v33_v2 = vld [vmem:[%s1957_s0] sm:$0xff]  ;;  %v34_v3 = vld [vmem:[%s1957_s0 + $0x8] sm:$0xff]  ;;  %v36_v6 = vld [vmem:[%s1957_s0 + $0x18] sm:$0xff] }
   0x3   :  { %v63_v4 = vpack.c.bf16 %v34_v3, %v33_v2  ;;  %v64_v7 = vpack.c.bf16 %v36_v6, %v35_v5  ;;  %v37_v8 = vld [vmem:[%s1957_s0 + $0x20] sm:$0xff]  ;;  %v38_v9 = vld [vmem:[%s1957_s0 + $0x28] sm:$0xff]  ;;  %v39_v11 = vld [vmem:[%s1957_s0 + $0x30] sm:$0xff] }
   0x4   :  { %v65_v10 = vpack.c.bf16 %v38_v9, %v37_v8  ;;  %v40_v12 = vld [vmem:[%s1957_s0 + $0x38] sm:$0xff]  ;;  %v41_v14 = vld [vmem:[%s1957_s0 + $0x40] sm:$0xff]  ;;  %v42_v15 = vld [vmem:[%s1957_s0 + $0x48] sm:$0xff] }
   0x5   :  { %v66_v13 = vpack.c.bf16 %v40_v12, %v39_v11  ;;  %v67_v16 = vpack.c.bf16 %v42_v15, %v41_v14  ;;  %v43_v17 = vld [vmem:[%s1957_s0 + $0x50] sm:$0xff]  ;;  %v44_v18 = vld [vmem:[%s1957_s0 + $0x58] sm:$0xff]  ;;  %v45_v20 = vld [vmem:[%s1957_s0 + $0x60] sm:$0xff] }
   0x6   :  { %138 = vmatpush.bf16.msra.mxu0 %v1417_v1  ;;  %v68_v19 = vpack.c.bf16 %v44_v18, %v43_v17  ;;  %v46_v21 = vld [vmem:[%s1957_s0 + $0x68] sm:$0xff]  ;;  %v47_v23 = vld [vmem:[%s1957_s0 + $0x70] sm:$0xff]  ;;  %v48_v24 = vld [vmem:[%s1957_s0 + $0x78] sm:$0xff] }
   0x7   :  { %v69_v22 = vpack.c.bf16 %v46_v21, %v45_v20  ;;  %v1419_v25 = vld [vmem:[%s1959_s3] sm:$0xff]  ;;  %v70_v26 = vpack.c.bf16 %v48_v24, %v47_v23  ;;  %v50_v28 = vld [vmem:[%s1957_s0 + $0x88] sm:$0xff]  ;;  %v51_v37 = vld [vmem:[%s1957_s0 + $0x90] sm:$0xff] }
   0x8   :  { %326 = vmatpush.bf16.msra.mxu1 %v1419_v25  ;;  %v49_v27 = vld [vmem:[%s1957_s0 + $0x80] sm:$0xff]  ;;  %v52_v38 = vld [vmem:[%s1957_s0 + $0x98] sm:$0xff]  ;;  %v54_v50 = vld [vmem:[%s1957_s0 + $0xa8] sm:$0xff] }
   0x9   :  { %1312 = vmatmul.msk.bf16.vlgmr.msra.gmra.mxu0 %vm91_vm0, %v63_v4  ;;  %v71_v29 = vpack.c.bf16 %v50_v28, %v49_v27  ;;  %v1655_v31 = vld [vmem:[%s1958_s2] ss:$0 sm:$0xff]  ;;  %v72_v42 = vpack.c.bf16 %v52_v38, %v51_v37  ;;  %v55_v61 = vld [vmem:[%s1957_s0 + $0xb0] sm:$0xff]  ;;  %v56_v62 = vld [vmem:[%s1957_s0 + $0xb8] sm:$0xff] }
   0xa   :  { %v53_v49 = vld [vmem:[%s1957_s0 + $0xa0] sm:$0xff]  ;;  %v74_v2 = vpack.c.bf16 %v56_v62, %v55_v61 }
   0xb   :  { %v73_v54 = vpack.c.bf16 %v54_v50, %v53_v49  ;;  %v57_v9 = vld [vmem:[%s1957_s0 + $0xc0] sm:$0xff] }
   0xc   :  { %v1718_v62 = vld [vmem:[%s1960_s4] ss:$0 sm:$0xff] }
  0x19   :  { %1313 = vmatmul.msk.bf16.gmra.mxu0 %vm91_vm0, %v64_v7 }
  0x29   :  { %1314 = vmatmul.msk.bf16.gmra.mxu0 %vm91_vm0, %v65_v10 }
  0x39   :  { %1315 = vmatmul.msk.bf16.gmra.mxu0 %vm91_vm0, %v66_v13  ;;  %v75_v13 = vpack.c.bf16 %v57_v9, %v57_v9 }
  0x49   :  { %1316 = vmatmul.msk.bf16.gmra.mxu0 %vm91_vm0, %v67_v16 }
  0x59   :  { %1317 = vmatmul.msk.bf16.gmra.mxu0 %vm91_vm0, %v68_v19 }
  0x69   :  { %1318 = vmatmul.msk.bf16.gmra.mxu0 %vm91_vm0, %v69_v22 }
  0x79   :  { %1319 = vmatmul.msk.bf16.gmra.mxu0 %vm91_vm0, %v70_v26 }
  0x86   :  { %v140_v30 = vpop.f32.mrf.mxu0 }
  0x87   :  { %v141_v32 = vadd.f32 %v1655_v31, %v140_v30 }
  0x89   :  { %1320 = vmatmul.msk.bf16.gmra.mxu0 %vm91_vm0, %v71_v29  ;;  %v204_v34 = vmul.f32 0.2, %v141_v32 }
  0x8b   :  { %v229_v39 = vmax.f32 %v141_v32, %v204_v34 }
  0x8e   :  { %v142_v33 = vpop.f32.mrf.mxu0 }
  0x8f   :  { %v143_v35 = vadd.f32 %v1655_v31, %v142_v33 }
  0x91   :  { %v205_v36 = vmul.f32 0.2, %v143_v35 }
  0x93   :  { %v230_v40 = vmax.f32 %v143_v35, %v205_v36 }
  0x95   :  { %v257_v41 = vpack.c.bf16 %v230_v40, %v229_v39 }
  0x96   :  { %v145_v43 = vpop.f32.mrf.mxu0 }
  0x97   :  { %1329 = vmatmul.msk.bf16.vlgmr.msra.gmra.mxu1 %vm279_vm1, %v257_v41  ;;  %v146_v44 = vadd.f32 %v1655_v31, %v145_v43 }
  0x99   :  { %1321 = vmatmul.msk.bf16.gmra.mxu0 %vm91_vm0, %v72_v42  ;;  %v206_v46 = vmul.f32 0.2, %v146_v44 }
  0x9b   :  { %v231_v51 = vmax.f32 %v146_v44, %v206_v46  ;;  %v1421_v44 = vld [vmem:[%s1961_s5 + $0x8] sm:$0xff] }
  0x9c   :  { %520 = vmatpush.bf16.msra.mxu2 %v1421_v44 }
  0x9e   :  { %v147_v45 = vpop.f32.mrf.mxu0 }
  0x9f   :  { %v148_v47 = vadd.f32 %v1655_v31, %v147_v45 }
  0xa1   :  { %v207_v48 = vmul.f32 0.2, %v148_v47 }
  0xa3   :  { %v232_v52 = vmax.f32 %v148_v47, %v207_v48  ;;  %v1420_v48 = vld [vmem:[%s1961_s5] sm:$0xff] }
  0xa4   :  { %521 = vmatpush.bf16.msra.mxu2 %v1420_v48 }
  0xa5   :  { %v258_v53 = vpack.c.bf16 %v232_v52, %v231_v51 }
  0xa6   :  { %v150_v55 = vpop.f32.mrf.mxu0 }
  0xa7   :  { %1330 = vmatmul.msk.bf16.gmra.mxu1 %vm279_vm1, %v258_v53  ;;  %v151_v56 = vadd.f32 %v1655_v31, %v150_v55 }
  0xa9   :  { %1322 = vmatmul.msk.bf16.gmra.mxu0 %vm91_vm0, %v73_v54  ;;  %v208_v58 = vmul.f32 0.2, %v151_v56 }
  0xab   :  { %v233_v63 = vmax.f32 %v151_v56, %v208_v58 }
  0xae   :  { %v152_v57 = vpop.f32.mrf.mxu0 }
  0xaf   :  { %v153_v59 = vadd.f32 %v1655_v31, %v152_v57 }
  0xb1   :  { %v209_v60 = vmul.f32 0.2, %v153_v59 }
  0xb3   :  { %v234_v0 = vmax.f32 %v153_v59, %v209_v60 }
  0xb5   :  { %v259_v1 = vpack.c.bf16 %v234_v0, %v233_v63 }
  0xb6   :  { %v155_v3 = vpop.f32.mrf.mxu0 }
  0xb7   :  { %1331 = vmatmul.msk.bf16.gmra.mxu1 %vm279_vm1, %v259_v1  ;;  %v156_v4 = vadd.f32 %v1655_v31, %v155_v3 }
  0xb9   :  { %1323 = vmatmul.msk.bf16.gmra.mxu0 %vm91_vm0, %v74_v2  ;;  %v210_v6 = vmul.f32 0.2, %v156_v4 }
  0xbb   :  { %v235_v10 = vmax.f32 %v156_v4, %v210_v6 }
  0xbe   :  { %v157_v5 = vpop.f32.mrf.mxu0 }
  0xbf   :  { %v158_v7 = vadd.f32 %v1655_v31, %v157_v5 }
  0xc1   :  { %v211_v8 = vmul.f32 0.2, %v158_v7 }
  0xc3   :  { %v236_v11 = vmax.f32 %v158_v7, %v211_v8 }
  0xc5   :  { %v260_v12 = vpack.c.bf16 %v236_v11, %v235_v10 }
  0xc6   :  { %v160_v14 = vpop.f32.mrf.mxu0 }
  0xc7   :  { %1332 = vmatmul.msk.bf16.gmra.mxu1 %vm279_vm1, %v260_v12  ;;  %v161_v15 = vadd.f32 %v1655_v31, %v160_v14 }
  0xc9   :  { %1324 = vmatmul.msk.bf16.gmra.mxu0 %vm91_vm0, %v75_v13  ;;  %v212_v17 = vmul.f32 0.2, %v161_v15 }
  0xcb   :  { %v237_v20 = vmax.f32 %v161_v15, %v212_v17 }
  0xce   :  { %v162_v16 = vpop.f32.mrf.mxu0 }
  0xcf   :  { %v163_v18 = vadd.f32 %v1655_v31, %v162_v16 }
  0xd1   :  { %v213_v19 = vmul.f32 0.2, %v163_v18 }
  0xd3   :  { %v238_v21 = vmax.f32 %v163_v18, %v213_v19 }
  0xd5   :  { %v261_v22 = vpack.c.bf16 %v238_v21, %v237_v20 }
  0xd6   :  { %v165_v23 = vpop.f32.mrf.mxu0 }
  0xd7   :  { %1333 = vmatmul.msk.bf16.gmra.mxu1 %vm279_vm1, %v261_v22  ;;  %v166_v24 = vadd.f32 %v1655_v31, %v165_v23 }
  0xd9   :  { %v214_v26 = vmul.f32 0.2, %v166_v24 }
  0xdb   :  { %v239_v29 = vmax.f32 %v166_v24, %v214_v26 }
  0xde   :  { %v167_v25 = vpop.f32.mrf.mxu0 }
  0xdf   :  { %v168_v27 = vadd.f32 %v1655_v31, %v167_v25 }
  0xe1   :  { %v215_v28 = vmul.f32 0.2, %v168_v27 }
  0xe3   :  { %v240_v30 = vmax.f32 %v168_v27, %v215_v28 }
  0xe5   :  { %v262_v32 = vpack.c.bf16 %v240_v30, %v239_v29 }
  0xe6   :  { %v170_v33 = vpop.f32.mrf.mxu0 }
  0xe7   :  { %1334 = vmatmul.msk.bf16.gmra.mxu1 %vm279_vm1, %v262_v32  ;;  %v171_v34 = vadd.f32 %v1655_v31, %v170_v33 }
  0xe9   :  { %v216_v36 = vmul.f32 0.2, %v171_v34 }
  0xeb   :  { %v241_v39 = vmax.f32 %v171_v34, %v216_v36 }
  0xee   :  { %v172_v35 = vpop.f32.mrf.mxu0 }
  0xef   :  { %v173_v37 = vadd.f32 %v1655_v31, %v172_v35 }
  0xf1   :  { %v217_v38 = vmul.f32 0.2, %v173_v37 }
  0xf3   :  { %v242_v40 = vmax.f32 %v173_v37, %v217_v38 }
  0xf5   :  { %v263_v41 = vpack.c.bf16 %v242_v40, %v241_v39 }
  0xf6   :  { %v175_v42 = vpop.f32.mrf.mxu0 }
  0xf7   :  { %1335 = vmatmul.msk.bf16.gmra.mxu1 %vm279_vm1, %v263_v41  ;;  %v176_v43 = vadd.f32 %v1655_v31, %v175_v42 }
  0xf9   :  { %v218_v46 = vmul.f32 0.2, %v176_v43 }
  0xfb   :  { %v243_v50 = vmax.f32 %v176_v43, %v218_v46 }
  0xfe   :  { %v177_v45 = vpop.f32.mrf.mxu0 }
  0xff   :  { %v178_v47 = vadd.f32 %v1655_v31, %v177_v45 }
 0x101   :  { %v219_v49 = vmul.f32 0.2, %v178_v47 }
 0x103   :  { %v244_v51 = vmax.f32 %v178_v47, %v219_v49 }
 0x105   :  { %v264_v52 = vpack.c.bf16 %v244_v51, %v243_v50 }
 0x106   :  { %v180_v53 = vpop.f32.mrf.mxu0 }
 0x107   :  { %1336 = vmatmul.msk.bf16.gmra.mxu1 %vm279_vm1, %v264_v52  ;;  %v181_v54 = vadd.f32 %v1655_v31, %v180_v53 }
 0x109   :  { %v220_v56 = vmul.f32 0.2, %v181_v54 }
 0x10b   :  { %v245_v59 = vmax.f32 %v181_v54, %v220_v56 }
 0x10e   :  { %v182_v55 = vpop.f32.mrf.mxu0 }
 0x10f   :  { %v183_v57 = vadd.f32 %v1655_v31, %v182_v55 }
 0x111   :  { %v221_v58 = vmul.f32 0.2, %v183_v57 }
 0x113   :  { %v246_v60 = vmax.f32 %v183_v57, %v221_v58 }
 0x114   :  { %v328_v61 = vpop.f32.mrf.mxu1 }
 0x115   :  { %v265_v63 = vpack.c.bf16 %v246_v60, %v245_v59  ;;  %v329_v1 = vadd.f32 %v1718_v62, %v328_v61 }
 0x116   :  { %v185_v0 = vpop.f32.mrf.mxu0 }
 0x117   :  { %1337 = vmatmul.msk.bf16.gmra.mxu1 %vm279_vm1, %v265_v63  ;;  %v186_v2 = vadd.f32 %v1655_v31, %v185_v0  ;;  %v392_v4 = vmul.f32 0.2, %v329_v1 }
 0x119   :  { %v222_v7 = vmul.f32 0.2, %v186_v2  ;;  %v417_v10 = vmax.f32 %v329_v1, %v392_v4 }
 0x11b   :  { %v247_v13 = vmax.f32 %v186_v2, %v222_v7 }
 0x11c   :  { %v330_v3 = vpop.f32.mrf.mxu1 }
 0x11d   :  { %v331_v5 = vadd.f32 %v1718_v62, %v330_v3 }
 0x11e   :  { %v187_v6 = vpop.f32.mrf.mxu0 }
 0x11f   :  { %v393_v8 = vmul.f32 0.2, %v331_v5  ;;  %v188_v9 = vadd.f32 %v1655_v31, %v187_v6 }
 0x121   :  { %v418_v11 = vmax.f32 %v331_v5, %v393_v8  ;;  %v223_v12 = vmul.f32 0.2, %v188_v9 }
 0x123   :  { %v248_v14 = vmax.f32 %v188_v9, %v223_v12  ;;  %v447_v15 = vpack.c.bf16 %v418_v11, %v417_v10 }
 0x124   :  { %v333_v16 = vpop.f32.mrf.mxu1 }
 0x125   :  { %1350 = vmatmul.msk.bf16.vlgmr.msra.gmra.mxu2 %vm91_vm0, %v447_v15  ;;  %v266_v17 = vpack.c.bf16 %v248_v14, %v247_v13  ;;  %v334_v19 = vadd.f32 %v1718_v62, %v333_v16 }
 0x126   :  { %v190_v18 = vpop.f32.mrf.mxu0 }
 0x127   :  { %1338 = vmatmul.msk.bf16.gmra.mxu1 %vm279_vm1, %v266_v17  ;;  %v191_v20 = vadd.f32 %v1655_v31, %v190_v18  ;;  %v394_v22 = vmul.f32 0.2, %v334_v19 }
 0x129   :  { %v224_v25 = vmul.f32 0.2, %v191_v20  ;;  %v419_v28 = vmax.f32 %v334_v19, %v394_v22 }
 0x12b   :  { %v249_v32 = vmax.f32 %v191_v20, %v224_v25 }
 0x12c   :  { %v335_v21 = vpop.f32.mrf.mxu1 }
 0x12d   :  { %v336_v23 = vadd.f32 %v1718_v62, %v335_v21 }
 0x12e   :  { %v192_v24 = vpop.f32.mrf.mxu0 }
 0x12f   :  { %v395_v26 = vmul.f32 0.2, %v336_v23  ;;  %v193_v27 = vadd.f32 %v1655_v31, %v192_v24 }
 0x131   :  { %v420_v29 = vmax.f32 %v336_v23, %v395_v26  ;;  %v225_v30 = vmul.f32 0.2, %v193_v27 }
 0x133   :  { %v250_v33 = vmax.f32 %v193_v27, %v225_v30  ;;  %v448_v34 = vpack.c.bf16 %v420_v29, %v419_v28 }
 0x134   :  { %v338_v35 = vpop.f32.mrf.mxu1 }
 0x135   :  { %1351 = vmatmul.msk.bf16.gmra.mxu2 %vm91_vm0, %v448_v34  ;;  %v267_v36 = vpack.c.bf16 %v250_v33, %v249_v32  ;;  %v339_v38 = vadd.f32 %v1718_v62, %v338_v35  ;;  %v1425_v34 = vld [vmem:[%s1963_s7 + $0x18] sm:$0xff] }
 0x136   :  { %v195_v37 = vpop.f32.mrf.mxu0  ;;  %730 = vmatpush.bf16.msra.mxu3 %v1425_v34 }
 0x137   :  { %1339 = vmatmul.msk.bf16.gmra.mxu1 %vm279_vm1, %v267_v36  ;;  %v196_v39 = vadd.f32 %v1655_v31, %v195_v37  ;;  %v396_v41 = vmul.f32 0.2, %v339_v38  ;;  %v1424_v37 = vld [vmem:[%s1963_s7 + $0x10] sm:$0xff] }
 0x139   :  { %v226_v44 = vmul.f32 0.2, %v196_v39  ;;  %v421_v47 = vmax.f32 %v339_v38, %v396_v41  ;;  %v1423_v41 = vld [vmem:[%s1963_s7 + $0x8] sm:$0xff] }
 0x13a   :  { %731 = vmatpush.bf16.msra.mxu3 %v1424_v37 }
 0x13b   :  { %v251_v50 = vmax.f32 %v196_v39, %v226_v44 }
 0x13c   :  { %v340_v40 = vpop.f32.mrf.mxu1 }
 0x13d   :  { %v341_v42 = vadd.f32 %v1718_v62, %v340_v40 }
 0x13e   :  { %v197_v43 = vpop.f32.mrf.mxu0  ;;  %732 = vmatpush.bf16.msra.mxu3 %v1423_v41 }
 0x13f   :  { %v397_v45 = vmul.f32 0.2, %v341_v42  ;;  %v198_v46 = vadd.f32 %v1655_v31, %v197_v43 }
 0x141   :  { %v422_v48 = vmax.f32 %v341_v42, %v397_v45  ;;  %v227_v49 = vmul.f32 0.2, %v198_v46 }
 0x143   :  { %v252_v51 = vmax.f32 %v198_v46, %v227_v49  ;;  %v449_v52 = vpack.c.bf16 %v422_v48, %v421_v47  ;;  %v1422_v46 = vld [vmem:[%s1963_s7] sm:$0xff] }
 0x144   :  { %v343_v53 = vpop.f32.mrf.mxu1  ;;  %733 = vmatpush.bf16.msra.mxu3 %v1422_v46 }
 0x145   :  { %1352 = vmatmul.msk.bf16.gmra.mxu2 %vm91_vm0, %v449_v52  ;;  %v268_v54 = vpack.c.bf16 %v252_v51, %v251_v50  ;;  %v344_v57 = vadd.f32 %v1718_v62, %v343_v53 }
 0x146   :  { %v200_v55 = vpop.f32.mrf.mxu0 }
 0x147   :  { %1340 = vmatmul.msk.bf16.gmra.mxu1 %vm279_vm1, %v268_v54  ;;  %v201_v56 = vadd.f32 %v1655_v31, %v200_v55  ;;  %v398_v60 = vmul.f32 0.2, %v344_v57 }
 0x149   :  { %v228_v58 = vmul.f32 0.2, %v201_v56  ;;  %v423_v2 = vmax.f32 %v344_v57, %v398_v60 }
 0x14b   :  { %v253_v1 = vmax.f32 %v201_v56, %v228_v58  ;;  %v1775_v58 = vld [vmem:[%s1962_s6] ss:$0 sm:$0xff] }
 0x14c   :  { %v345_v59 = vpop.f32.mrf.mxu1 }
 0x14d   :  { %v346_v61 = vadd.f32 %v1718_v62, %v345_v59  ;;  %v269_v4 = vpack.c.bf16 %v253_v1, %v253_v1 }
 0x14e   :  { %v202_v63 = vpop.f32.mrf.mxu0 }
 0x14f   :  { %v399_v0 = vmul.f32 0.2, %v346_v61 }
 0x151   :  { %v424_v3 = vmax.f32 %v346_v61, %v399_v0 }
 0x153   :  { %v450_v5 = vpack.c.bf16 %v424_v3, %v423_v2 }
 0x154   :  { %v348_v6 = vpop.f32.mrf.mxu1 }
 0x155   :  { %1353 = vmatmul.msk.bf16.gmra.mxu2 %vm91_vm0, %v450_v5  ;;  %v349_v31 = vadd.f32 %v1718_v62, %v348_v6 }
 0x157   :  { %1341 = vmatmul.msk.bf16.gmra.mxu1 %vm279_vm1, %v269_v4  ;;  %v400_v8 = vmul.f32 0.2, %v349_v31 }
 0x159   :  { %v425_v11 = vmax.f32 %v349_v31, %v400_v8 }
 0x15c   :  { %v350_v7 = vpop.f32.mrf.mxu1 }
 0x15d   :  { %v351_v9 = vadd.f32 %v1718_v62, %v350_v7 }
 0x15f   :  { %v401_v10 = vmul.f32 0.2, %v351_v9 }
 0x161   :  { %v426_v12 = vmax.f32 %v351_v9, %v401_v10 }
 0x163   :  { %v451_v13 = vpack.c.bf16 %v426_v12, %v425_v11 }
 0x164   :  { %v353_v14 = vpop.f32.mrf.mxu1 }
 0x165   :  { %1354 = vmatmul.msk.bf16.gmra.mxu2 %vm91_vm0, %v451_v13  ;;  %v354_v15 = vadd.f32 %v1718_v62, %v353_v14 }
 0x167   :  { %v402_v17 = vmul.f32 0.2, %v354_v15 }
 0x169   :  { %v427_v20 = vmax.f32 %v354_v15, %v402_v17 }
 0x16c   :  { %v355_v16 = vpop.f32.mrf.mxu1 }
 0x16d   :  { %v356_v18 = vadd.f32 %v1718_v62, %v355_v16 }
 0x16f   :  { %v403_v19 = vmul.f32 0.2, %v356_v18 }
 0x171   :  { %v428_v21 = vmax.f32 %v356_v18, %v403_v19 }
 0x173   :  { %v452_v22 = vpack.c.bf16 %v428_v21, %v427_v20 }
 0x174   :  { %v358_v23 = vpop.f32.mrf.mxu1 }
 0x175   :  { %1355 = vmatmul.msk.bf16.gmra.mxu2 %vm91_vm0, %v452_v22  ;;  %v359_v24 = vadd.f32 %v1718_v62, %v358_v23 }
 0x177   :  { %v404_v26 = vmul.f32 0.2, %v359_v24 }
 0x179   :  { %v429_v29 = vmax.f32 %v359_v24, %v404_v26 }
 0x17c   :  { %v360_v25 = vpop.f32.mrf.mxu1 }
 0x17d   :  { %v361_v27 = vadd.f32 %v1718_v62, %v360_v25 }
 0x17f   :  { %v405_v28 = vmul.f32 0.2, %v361_v27 }
 0x181   :  { %v430_v30 = vmax.f32 %v361_v27, %v405_v28 }
 0x183   :  { %v453_v32 = vpack.c.bf16 %v430_v30, %v429_v29 }
 0x184   :  { %v363_v33 = vpop.f32.mrf.mxu1 }
 0x185   :  { %1356 = vmatmul.msk.bf16.gmra.mxu2 %vm91_vm0, %v453_v32  ;;  %v364_v35 = vadd.f32 %v1718_v62, %v363_v33 }
 0x187   :  { %v406_v38 = vmul.f32 0.2, %v364_v35 }
 0x189   :  { %v431_v42 = vmax.f32 %v364_v35, %v406_v38 }
 0x18c   :  { %v365_v36 = vpop.f32.mrf.mxu1 }
 0x18d   :  { %v366_v39 = vadd.f32 %v1718_v62, %v365_v36 }
 0x18f   :  { %v407_v40 = vmul.f32 0.2, %v366_v39 }
 0x191   :  { %v432_v43 = vmax.f32 %v366_v39, %v407_v40 }
 0x193   :  { %v454_v44 = vpack.c.bf16 %v432_v43, %v431_v42 }
 0x194   :  { %v368_v45 = vpop.f32.mrf.mxu1 }
 0x195   :  { %1357 = vmatmul.msk.bf16.gmra.mxu2 %vm91_vm0, %v454_v44  ;;  %v369_v47 = vadd.f32 %v1718_v62, %v368_v45 }
 0x197   :  { %v408_v49 = vmul.f32 0.2, %v369_v47 }
 0x199   :  { %v433_v52 = vmax.f32 %v369_v47, %v408_v49 }
 0x19c   :  { %v370_v48 = vpop.f32.mrf.mxu1 }
 0x19d   :  { %v371_v50 = vadd.f32 %v1718_v62, %v370_v48 }
 0x19f   :  { %v409_v51 = vmul.f32 0.2, %v371_v50 }
 0x1a1   :  { %v434_v53 = vmax.f32 %v371_v50, %v409_v51 }
 0x1a3   :  { %v455_v54 = vpack.c.bf16 %v434_v53, %v433_v52 }
 0x1a4   :  { %v373_v55 = vpop.f32.mrf.mxu1 }
 0x1a5   :  { %1358 = vmatmul.msk.bf16.gmra.mxu2 %vm91_vm0, %v455_v54  ;;  %v374_v57 = vadd.f32 %v1718_v62, %v373_v55 }
 0x1a7   :  { %v410_v60 = vmul.f32 0.2, %v374_v57 }
 0x1a8   :  { %v523_v56 = vpop.f32.mrf.mxu2 }
 0x1a9   :  { %v524_v61 = vadd.f32 %v1775_v58, %v523_v56  ;;  %v435_v2 = vmax.f32 %v374_v57, %v410_v60 }
 0x1ab   :  { %v587_v3 = vmul.f32 0.2, %v524_v61 }
 0x1ac   :  { %v375_v59 = vpop.f32.mrf.mxu1 }
 0x1ad   :  { %v376_v63 = vadd.f32 %v1718_v62, %v375_v59  ;;  %v612_v8 = vmax.f32 %v524_v61, %v587_v3 }
 0x1af   :  { %v411_v0 = vmul.f32 0.2, %v376_v63 }
 0x1b0   :  { %v525_v1 = vpop.f32.mrf.mxu2 }
 0x1b1   :  { %v436_v4 = vmax.f32 %v376_v63, %v411_v0  ;;  %v526_v5 = vadd.f32 %v1775_v58, %v525_v1 }
 0x1b3   :  { %v588_v6 = vmul.f32 0.2, %v526_v5  ;;  %v456_v31 = vpack.c.bf16 %v436_v4, %v435_v2 }
 0x1b4   :  { %v378_v7 = vpop.f32.mrf.mxu1 }
 0x1b5   :  { %v613_v9 = vmax.f32 %v526_v5, %v588_v6  ;;  %1359 = vmatmul.msk.bf16.gmra.mxu2 %vm91_vm0, %v456_v31  ;;  %v379_v12 = vadd.f32 %v1718_v62, %v378_v7 }
 0x1b7   :  { %v646_v10 = vpack.c.bf16 %v613_v9, %v612_v8  ;;  %v412_v14 = vmul.f32 0.2, %v379_v12 }
 0x1b8   :  { %v528_v11 = vpop.f32.mrf.mxu2 }
 0x1b9   :  { %1379 = vmatmul.msk.bf16.vlgmr.msra.gmra.mxu3 %vm686_vm2, %v646_v10  ;;  %v529_v15 = vadd.f32 %v1775_v58, %v528_v11  ;;  %v437_v19 = vmax.f32 %v379_v12, %v412_v14 }
 0x1bb   :  { %v589_v20 = vmul.f32 0.2, %v529_v15 }
 0x1bc   :  { %v380_v13 = vpop.f32.mrf.mxu1 }
 0x1bd   :  { %v381_v16 = vadd.f32 %v1718_v62, %v380_v13  ;;  %v614_v26 = vmax.f32 %v529_v15, %v589_v20 }
 0x1bf   :  { %v413_v17 = vmul.f32 0.2, %v381_v16 }
 0x1c0   :  { %v530_v18 = vpop.f32.mrf.mxu2 }
 0x1c1   :  { %v438_v21 = vmax.f32 %v381_v16, %v413_v17  ;;  %v531_v22 = vadd.f32 %v1775_v58, %v530_v18 }
 0x1c3   :  { %v590_v23 = vmul.f32 0.2, %v531_v22  ;;  %v457_v24 = vpack.c.bf16 %v438_v21, %v437_v19 }
 0x1c4   :  { %v383_v25 = vpop.f32.mrf.mxu1 }
 0x1c5   :  { %v615_v27 = vmax.f32 %v531_v22, %v590_v23  ;;  %1360 = vmatmul.msk.bf16.gmra.mxu2 %vm91_vm0, %v457_v24  ;;  %v384_v30 = vadd.f32 %v1718_v62, %v383_v25 }
 0x1c7   :  { %v647_v28 = vpack.c.bf16 %v615_v27, %v614_v26  ;;  %v414_v33 = vmul.f32 0.2, %v384_v30 }
 0x1c8   :  { %v533_v29 = vpop.f32.mrf.mxu2 }
 0x1c9   :  { %1380 = vmatmul.msk.bf16.gmra.mxu3 %vm686_vm2, %v647_v28  ;;  %v534_v34 = vadd.f32 %v1775_v58, %v533_v29  ;;  %v439_v38 = vmax.f32 %v384_v30, %v414_v33 }
 0x1cb   :  { %v591_v39 = vmul.f32 0.2, %v534_v34 }
 0x1cc   :  { %v385_v32 = vpop.f32.mrf.mxu1 }
 0x1cd   :  { %v386_v35 = vadd.f32 %v1718_v62, %v385_v32  ;;  %v616_v45 = vmax.f32 %v534_v34, %v591_v39 }
 0x1cf   :  { %v415_v36 = vmul.f32 0.2, %v386_v35 }
 0x1d0   :  { %v535_v37 = vpop.f32.mrf.mxu2 }
 0x1d1   :  { %v440_v40 = vmax.f32 %v386_v35, %v415_v36  ;;  %v536_v41 = vadd.f32 %v1775_v58, %v535_v37 }
 0x1d3   :  { %v592_v42 = vmul.f32 0.2, %v536_v41  ;;  %v458_v43 = vpack.c.bf16 %v440_v40, %v439_v38 }
 0x1d4   :  { %v388_v44 = vpop.f32.mrf.mxu1 }
 0x1d5   :  { %v617_v46 = vmax.f32 %v536_v41, %v592_v42  ;;  %1361 = vmatmul.msk.bf16.gmra.mxu2 %vm91_vm0, %v458_v43  ;;  %v389_v47 = vadd.f32 %v1718_v62, %v388_v44 }
 0x1d7   :  { %v648_v48 = vpack.c.bf16 %v617_v46, %v616_v45  ;;  %v416_v50 = vmul.f32 0.2, %v389_v47  ;;  %v1817_v45 = vld [vmem:[%s1964_s8] ss:$0 sm:$0xff] }
 0x1d8   :  { %v538_v49 = vpop.f32.mrf.mxu2 }
 0x1d9   :  { %1381 = vmatmul.msk.bf16.gmra.mxu3 %vm686_vm2, %v648_v48  ;;  %v539_v52 = vadd.f32 %v1775_v58, %v538_v49  ;;  %v441_v53 = vmax.f32 %v389_v47, %v416_v50 }
 0x1db   :  { %v593_v55 = vmul.f32 0.2, %v539_v52  ;;  %v459_v56 = vpack.c.bf16 %v441_v53, %v441_v53 }
 0x1dc   :  { %v390_v51 = vpop.f32.mrf.mxu1 }
 0x1dd   :  { %v618_v60 = vmax.f32 %v539_v52, %v593_v55 }
 0x1e0   :  { %v540_v54 = vpop.f32.mrf.mxu2 }
 0x1e1   :  { %v541_v57 = vadd.f32 %v1775_v58, %v540_v54 }
 0x1e3   :  { %v594_v59 = vmul.f32 0.2, %v541_v57 }
 0x1e5   :  { %v619_v61 = vmax.f32 %v541_v57, %v594_v59  ;;  %1362 = vmatmul.msk.bf16.gmra.mxu2 %vm91_vm0, %v459_v56 }
 0x1e7   :  { %v649_v62 = vpack.c.bf16 %v619_v61, %v618_v60 }
 0x1e8   :  { %v543_v63 = vpop.f32.mrf.mxu2 }
 0x1e9   :  { %1382 = vmatmul.msk.bf16.gmra.mxu3 %vm686_vm2, %v649_v62  ;;  %v544_v0 = vadd.f32 %v1775_v58, %v543_v63 }
 0x1eb   :  { %v595_v2 = vmul.f32 0.2, %v544_v0 }
 0x1ed   :  { %v620_v5 = vmax.f32 %v544_v0, %v595_v2 }
 0x1f0   :  { %v545_v1 = vpop.f32.mrf.mxu2 }
 0x1f1   :  { %v546_v3 = vadd.f32 %v1775_v58, %v545_v1 }
 0x1f3   :  { %v596_v4 = vmul.f32 0.2, %v546_v3 }
 0x1f5   :  { %v621_v6 = vmax.f32 %v546_v3, %v596_v4 }
 0x1f7   :  { %v650_v31 = vpack.c.bf16 %v621_v6, %v620_v5 }
 0x1f8   :  { %v548_v7 = vpop.f32.mrf.mxu2 }
 0x1f9   :  { %1383 = vmatmul.msk.bf16.gmra.mxu3 %vm686_vm2, %v650_v31  ;;  %v549_v8 = vadd.f32 %v1775_v58, %v548_v7 }
 0x1fb   :  { %v597_v10 = vmul.f32 0.2, %v549_v8 }
 0x1fd   :  { %v622_v13 = vmax.f32 %v549_v8, %v597_v10 }
 0x200   :  { %v550_v9 = vpop.f32.mrf.mxu2 }
 0x201   :  { %v551_v11 = vadd.f32 %v1775_v58, %v550_v9 }
 0x203   :  { %v598_v12 = vmul.f32 0.2, %v551_v11 }
 0x205   :  { %v623_v14 = vmax.f32 %v551_v11, %v598_v12 }
 0x207   :  { %v651_v15 = vpack.c.bf16 %v623_v14, %v622_v13 }
 0x208   :  { %v553_v16 = vpop.f32.mrf.mxu2 }
 0x209   :  { %1384 = vmatmul.msk.bf16.gmra.mxu3 %vm686_vm2, %v651_v15  ;;  %v554_v17 = vadd.f32 %v1775_v58, %v553_v16 }
 0x20b   :  { %v599_v19 = vmul.f32 0.2, %v554_v17 }
 0x20d   :  { %v624_v22 = vmax.f32 %v554_v17, %v599_v19 }
 0x210   :  { %v555_v18 = vpop.f32.mrf.mxu2 }
 0x211   :  { %v556_v20 = vadd.f32 %v1775_v58, %v555_v18 }
 0x213   :  { %v600_v21 = vmul.f32 0.2, %v556_v20 }
 0x215   :  { %v625_v23 = vmax.f32 %v556_v20, %v600_v21 }
 0x217   :  { %v652_v24 = vpack.c.bf16 %v625_v23, %v624_v22 }
 0x218   :  { %v558_v25 = vpop.f32.mrf.mxu2 }
 0x219   :  { %1385 = vmatmul.msk.bf16.gmra.mxu3 %vm686_vm2, %v652_v24  ;;  %v559_v26 = vadd.f32 %v1775_v58, %v558_v25 }
 0x21b   :  { %v601_v28 = vmul.f32 0.2, %v559_v26 }
 0x21d   :  { %v626_v32 = vmax.f32 %v559_v26, %v601_v28 }
 0x220   :  { %v560_v27 = vpop.f32.mrf.mxu2 }
 0x221   :  { %v561_v29 = vadd.f32 %v1775_v58, %v560_v27 }
 0x223   :  { %v602_v30 = vmul.f32 0.2, %v561_v29 }
 0x225   :  { %v627_v33 = vmax.f32 %v561_v29, %v602_v30 }
 0x227   :  { %v653_v34 = vpack.c.bf16 %v627_v33, %v626_v32 }
 0x228   :  { %v563_v35 = vpop.f32.mrf.mxu2 }
 0x229   :  { %1386 = vmatmul.msk.bf16.gmra.mxu3 %vm686_vm2, %v653_v34  ;;  %v564_v36 = vadd.f32 %v1775_v58, %v563_v35 }
 0x22b   :  { %v603_v38 = vmul.f32 0.2, %v564_v36 }
 0x22d   :  { %v628_v41 = vmax.f32 %v564_v36, %v603_v38 }
 0x230   :  { %v565_v37 = vpop.f32.mrf.mxu2 }
 0x231   :  { %v566_v39 = vadd.f32 %v1775_v58, %v565_v37 }
 0x233   :  { %v604_v40 = vmul.f32 0.2, %v566_v39 }
 0x235   :  { %v629_v42 = vmax.f32 %v566_v39, %v604_v40 }
 0x237   :  { %v654_v43 = vpack.c.bf16 %v629_v42, %v628_v41 }
 0x238   :  { %v568_v44 = vpop.f32.mrf.mxu2 }
 0x239   :  { %1387 = vmatmul.msk.bf16.gmra.mxu3 %vm686_vm2, %v654_v43  ;;  %v569_v47 = vadd.f32 %v1775_v58, %v568_v44 }
 0x23b   :  { %v605_v51 = vmul.f32 0.2, %v569_v47 }
 0x23c   :  { %v735_v46 = vpop.f32.mrf.mxu3 }
 0x23d   :  { %v736_v48 = vadd.f32 %v1817_v45, %v735_v46  ;;  %v630_v55 = vmax.f32 %v569_v47, %v605_v51 }
 0x23f   :  { %v1392_v49 = vmul.f32 -1.442695, %v736_v48 }
 0x240   :  { %v570_v50 = vpop.f32.mrf.mxu2 }
 0x241   :  { %1430 = vpow2.f32 %v1392_v49  ;;  %v571_v52 = vadd.f32 %v1775_v58, %v570_v50 }
 0x243   :  { %v606_v53 = vmul.f32 0.2, %v571_v52 }
 0x244   :  { %v737_v54 = vpop.f32.mrf.mxu3 }
 0x245   :  { %v631_v56 = vmax.f32 %v571_v52, %v606_v53  ;;  %v738_v57 = vadd.f32 %v1817_v45, %v737_v54 }
 0x247   :  { %v1431_v59 = vpop.eup %1430  ;;  %v1393_v60 = vmul.f32 -1.442695, %v738_v57  ;;  %v655_v61 = vpack.c.bf16 %v631_v56, %v630_v55 }
 0x248   :  { %v874_v62 = vadd.f32 1.0, %v1431_v59  ;;  %v573_v63 = vpop.f32.mrf.mxu2 }
 0x249   :  { %1432 = vpow2.f32 %v1393_v60  ;;  %1388 = vmatmul.msk.bf16.gmra.mxu3 %vm686_vm2, %v655_v61  ;;  %v574_v0 = vadd.f32 %v1775_v58, %v573_v63 }
 0x24a   :  { %1434 = vrcp.f32 %v874_v62  ;;  %v908_v12 = vand.u32 2147483647, %v874_v62  ;;  %v910_v13 = vand.u32 2147483648, %v874_v62  ;;  %vm904_vm4 = vweird.f32 %v874_v62 }
 0x24b   :  { %v607_v31 = vmul.f32 0.2, %v574_v0 }
 0x24c   :  { %v740_v1 = vpop.f32.mrf.mxu3  ;;  %v911_v24 = vor.u32 1.1754944e-38, %v910_v13  ;;  %vm909_vm7 = vcmp.eq.f32.partialorder %v908_v12, 8.507059e+37 }
 0x24d   :  { %v741_v2 = vadd.f32 %v1817_v45, %v740_v1  ;;  %v632_v14 = vmax.f32 %v574_v0, %v607_v31 }
 0x24f   :  { %v1433_v3 = vpop.eup %1432  ;;  %v1394_v4 = vmul.f32 -1.442695, %v741_v2 }
 0x250   :  { %v1435_v5 = vpop.eup %1434  ;;  %v875_v6 = vadd.f32 1.0, %v1433_v3  ;;  %v575_v7 = vpop.f32.mrf.mxu2 }
 0x251   :  { %v900_v8 = vmul.f32 %v1435_v5, %v874_v62  ;;  %1436 = vpow2.f32 %v1394_v4  ;;  %v576_v9 = vadd.f32 %v1775_v58, %v575_v7  ;;  %vm905_vm3 = vweird.f32 %v1435_v5 }
 0x252   :  { %1438 = vrcp.f32 %v875_v6  ;;  %vm906_vm5 = vmor %vm904_vm4, %vm905_vm3  ;;  %v925_v32 = vand.u32 2147483648, %v875_v6  ;;  %v923_v35 = vand.u32 2147483647, %v875_v6  ;;  %vm919_vm9 = vweird.f32 %v875_v6 }
 0x253   :  { %v901_v10 = vsub.f32 1.0, %v900_v8  ;;  %v608_v11 = vmul.f32 0.2, %v576_v9 }
 0x254   :  { %v742_v15 = vpop.f32.mrf.mxu3  ;;  %v926_v41 = vor.u32 1.1754944e-38, %v925_v32  ;;  %vm924_vm11 = vcmp.eq.f32.partialorder %v923_v35, 8.507059e+37 }
 0x255   :  { %v902_v16 = vmul.f32 %v1435_v5, %v901_v10  ;;  %v633_v17 = vmax.f32 %v576_v9, %v608_v11  ;;  %v743_v18 = vadd.f32 %v1817_v45, %v742_v15 }
 0x257   :  { %v1437_v19 = vpop.eup %1436  ;;  %v903_v20 = vadd.f32 %v1435_v5, %v902_v16  ;;  %v1395_v21 = vmul.f32 -1.442695, %v743_v18  ;;  %v656_v22 = vpack.c.bf16 %v633_v17, %v632_v14 }
 0x258   :  { %v1439_v23 = vpop.eup %1438  ;;  %v876_v25 = vadd.f32 1.0, %v1437_v19  ;;  %v578_v26 = vpop.f32.mrf.mxu2 }
 0x259   :  { %v907_v27 = vsel %vm906_vm5, %v1435_v5, %v903_v20  ;;  %v915_v28 = vmul.f32 %v1439_v23, %v875_v6  ;;  %1440 = vpow2.f32 %v1395_v21  ;;  %1389 = vmatmul.msk.bf16.gmra.mxu3 %vm686_vm2, %v656_v22  ;;  %vm920_vm8 = vweird.f32 %v1439_v23 }
 0x25a   :  { %v912_v29 = vsel %vm909_vm7, %v911_v24, %v907_v27  ;;  %1442 = vrcp.f32 %v876_v25  ;;  %vm921_vm10 = vmor %vm919_vm9, %vm920_vm8  ;;  %v579_v43 = vadd.f32 %v1775_v58, %v578_v26  ;;  %v938_v51 = vand.u32 2147483647, %v876_v25 }
 0x25b   :  { %1275 = vst.msk [vmem:[%s1965_s9] sm:$0xff] %vm1274_vm6, %v912_v29  ;;  %v916_v30 = vsub.f32 1.0, %v915_v28  ;;  %v940_v52 = vand.u32 2147483648, %v876_v25  ;;  %vm934_vm13 = vweird.f32 %v876_v25 }
 0x25c   :  { %v745_v33 = vpop.f32.mrf.mxu3  ;;  %v609_v53 = vmul.f32 0.2, %v579_v43  ;;  %vm939_vm15 = vcmp.eq.f32.partialorder %v938_v51, 8.507059e+37 }
 0x25d   :  { %v917_v34 = vmul.f32 %v1439_v23, %v916_v30  ;;  %v746_v36 = vadd.f32 %v1817_v45, %v745_v33  ;;  %v941_v0 = vor.u32 1.1754944e-38, %v940_v52 }
 0x25e   :  { %v634_v5 = vmax.f32 %v579_v43, %v609_v53 }
 0x25f   :  { %v1441_v37 = vpop.eup %1440  ;;  %v918_v38 = vadd.f32 %v1439_v23, %v917_v34  ;;  %v1396_v39 = vmul.f32 -1.442695, %v746_v36 }
 0x260   :  { %v1443_v40 = vpop.eup %1442  ;;  %v877_v42 = vadd.f32 1.0, %v1441_v37  ;;  %v580_v44 = vpop.f32.mrf.mxu2 }
 0x261   :  { %v922_v46 = vsel %vm921_vm10, %v1439_v23, %v918_v38  ;;  %v930_v47 = vmul.f32 %v1443_v40, %v876_v25  ;;  %1444 = vpow2.f32 %v1396_v39  ;;  %v581_v50 = vadd.f32 %v1775_v58, %v580_v44 }
 0x262   :  { %v927_v48 = vsel %vm924_vm11, %v926_v41, %v922_v46  ;;  %1446 = vrcp.f32 %v877_v42  ;;  %vm935_vm12 = vweird.f32 %v1443_v40  ;;  %v955_v8 = vand.u32 2147483648, %v877_v42 }
 0x263   :  { %1276 = vst.msk [vmem:[%s1965_s9 + $0x8] sm:$0xff] %vm1274_vm6, %v927_v48  ;;  %v931_v49 = vsub.f32 1.0, %v930_v47  ;;  %v610_v56 = vmul.f32 0.2, %v581_v50  ;;  %vm936_vm14 = vmor %vm934_vm13, %vm935_vm12  ;;  %v953_v11 = vand.u32 2147483647, %v877_v42  ;;  %vm949_vm1 = vweird.f32 %v877_v42 }
 0x264   :  { %v747_v54 = vpop.f32.mrf.mxu3  ;;  %v956_v18 = vor.u32 1.1754944e-38, %v955_v8 }
 0x265   :  { %v932_v55 = vmul.f32 %v1443_v40, %v931_v49  ;;  %v748_v57 = vadd.f32 %v1817_v45, %v747_v54  ;;  %v635_v61 = vmax.f32 %v581_v50, %v610_v56  ;;  %vm954_vm4 = vcmp.eq.f32.partialorder %v953_v11, 8.507059e+37 }
 0x267   :  { %v1445_v59 = vpop.eup %1444  ;;  %v933_v60 = vadd.f32 %v1443_v40, %v932_v55  ;;  %v1397_v62 = vmul.f32 -1.442695, %v748_v57  ;;  %v657_v7 = vpack.c.bf16 %v635_v61, %v634_v5 }
 0x268   :  { %v1447_v63 = vpop.eup %1446  ;;  %v878_v1 = vadd.f32 1.0, %v1445_v59  ;;  %v583_v2 = vpop.f32.mrf.mxu2 }
 0x269   :  { %v937_v3 = vsel %vm936_vm14, %v1443_v40, %v933_v60  ;;  %v945_v4 = vmul.f32 %v1447_v63, %v877_v42  ;;  %1448 = vpow2.f32 %v1397_v62  ;;  %vm950_vm0 = vweird.f32 %v1447_v63  ;;  %1390 = vmatmul.msk.bf16.gmra.mxu3 %vm686_vm2, %v657_v7 }
 0x26a   :  { %v942_v6 = vsel %vm939_vm15, %v941_v0, %v937_v3  ;;  %1450 = vrcp.f32 %v878_v1  ;;  %v584_v15 = vadd.f32 %v1775_v58, %v583_v2  ;;  %vm951_vm3 = vmor %vm949_vm1, %vm950_vm0  ;;  %v970_v58 = vand.u32 2147483648, %v878_v1 }
 0x26b   :  { %1277 = vst.msk [vmem:[%s1965_s9 + $0x10] sm:$0xff] %vm1274_vm6, %v942_v6  ;;  %v946_v31 = vsub.f32 1.0, %v945_v4  ;;  %v968_v28 = vand.u32 2147483647, %v878_v1  ;;  %vm964_vm7 = vweird.f32 %v878_v1 }
 0x26c   :  { %v750_v9 = vpop.f32.mrf.mxu3  ;;  %v611_v25 = vmul.f32 0.2, %v584_v15  ;;  %v971_v35 = vor.u32 1.1754944e-38, %v970_v58 }
 0x26d   :  { %v947_v10 = vmul.f32 %v1447_v63, %v946_v31  ;;  %v751_v12 = vadd.f32 %v1817_v45, %v750_v9  ;;  %vm969_vm9 = vcmp.eq.f32.partialorder %v968_v28, 8.507059e+37 }
 0x26e   :  { %v636_v32 = vmax.f32 %v584_v15, %v611_v25 }
 0x26f   :  { %v1449_v13 = vpop.eup %1448  ;;  %v948_v14 = vadd.f32 %v1447_v63, %v947_v10  ;;  %v1398_v16 = vmul.f32 -1.442695, %v751_v12 }
 0x270   :  { %v1451_v17 = vpop.eup %1450  ;;  %v879_v19 = vadd.f32 1.0, %v1449_v13  ;;  %v585_v20 = vpop.f32.mrf.mxu2  ;;  %v658_v42 = vpack.c.bf16 %v636_v32, %v636_v32 }
 0x271   :  { %v952_v21 = vsel %vm951_vm3, %v1447_v63, %v948_v14  ;;  %v960_v22 = vmul.f32 %v1451_v17, %v878_v1  ;;  %vm965_vm5 = vweird.f32 %v1451_v17 }
 0x272   :  { %v957_v23 = vsel %vm954_vm4, %v956_v18, %v952_v21  ;;  %1452 = vrcp.f32 %v879_v19  ;;  %vm966_vm8 = vmor %vm964_vm7, %vm965_vm5  ;;  %v985_v43 = vand.u32 2147483648, %v879_v19  ;;  %v983_v47 = vand.u32 2147483647, %v879_v19 }
 0x273   :  { %1278 = vst.msk [vmem:[%s1965_s9 + $0x18] sm:$0xff] %vm1274_vm6, %v957_v23  ;;  %v961_v24 = vsub.f32 1.0, %v960_v22  ;;  %1454 = vpow2.f32 %v1398_v16  ;;  %vm979_vm11 = vweird.f32 %v879_v19 }
 0x274   :  { %v752_v26 = vpop.f32.mrf.mxu3  ;;  %v986_v52 = vor.u32 1.1754944e-38, %v985_v43  ;;  %vm984_vm13 = vcmp.eq.f32.partialorder %v983_v47, 8.507059e+37 }
 0x275   :  { %v962_v27 = vmul.f32 %v1451_v17, %v961_v24  ;;  %v753_v29 = vadd.f32 %v1817_v45, %v752_v26 }
 0x277   :  { %v963_v30 = vadd.f32 %v1451_v17, %v962_v27  ;;  %v1399_v33 = vmul.f32 -1.442695, %v753_v29 }
 0x278   :  { %v1453_v34 = vpop.eup %1452 }
 0x279   :  { %v1455_v36 = vpop.eup %1454  ;;  %v967_v37 = vsel %vm966_vm8, %v1451_v17, %v963_v30  ;;  %v975_v38 = vmul.f32 %v1453_v34, %v879_v19  ;;  %1456 = vpow2.f32 %v1399_v33  ;;  %vm980_vm10 = vweird.f32 %v1453_v34  ;;  %1391 = vmatmul.msk.bf16.gmra.mxu3 %vm686_vm2, %v658_v42 }
 0x27a   :  { %v972_v39 = vsel %vm969_vm9, %v971_v35, %v967_v37  ;;  %v880_v40 = vadd.f32 1.0, %v1455_v36  ;;  %vm981_vm12 = vmor %vm979_vm11, %vm980_vm10 }
 0x27b   :  { %1279 = vst.msk [vmem:[%s1965_s9 + $0x20] sm:$0xff] %vm1274_vm6, %v972_v39  ;;  %v976_v41 = vsub.f32 1.0, %v975_v38 }
 0x27c   :  { %1458 = vrcp.f32 %v880_v40  ;;  %v755_v44 = vpop.f32.mrf.mxu3  ;;  %v1000_v62 = vand.u32 2147483648, %v880_v40  ;;  %v998_v1 = vand.u32 2147483647, %v880_v40  ;;  %vm994_vm14 = vweird.f32 %v880_v40 }
 0x27d   :  { %v977_v46 = vmul.f32 %v1453_v34, %v976_v41  ;;  %v756_v48 = vadd.f32 %v1817_v45, %v755_v44 }
 0x27e   :  { %v1001_v31 = vor.u32 1.1754944e-38, %v1000_v62  ;;  %vm999_vm0 = vcmp.eq.f32.partialorder %v998_v1, 8.507059e+37 }
 0x27f   :  { %v1457_v49 = vpop.eup %1456  ;;  %v978_v50 = vadd.f32 %v1453_v34, %v977_v46  ;;  %v1400_v51 = vmul.f32 -1.442695, %v756_v48 }
 0x280   :  { %v881_v53 = vadd.f32 1.0, %v1457_v49 }
 0x281   :  { %v982_v54 = vsel %vm981_vm12, %v1453_v34, %v978_v50  ;;  %1460 = vpow2.f32 %v1400_v51 }
 0x282   :  { %v1459_v55 = vpop.eup %1458  ;;  %v987_v56 = vsel %vm984_vm13, %v986_v52, %v982_v54  ;;  %1462 = vrcp.f32 %v881_v53  ;;  %v1015_v10 = vand.u32 2147483648, %v881_v53  ;;  %v1013_v13 = vand.u32 2147483647, %v881_v53 }
 0x283   :  { %1280 = vst.msk [vmem:[%s1965_s9 + $0x28] sm:$0xff] %vm1274_vm6, %v987_v56  ;;  %v990_v57 = vmul.f32 %v1459_v55, %v880_v40  ;;  %vm995_vm2 = vweird.f32 %v1459_v55  ;;  %vm1009_vm3 = vweird.f32 %v881_v53 }
 0x284   :  { %v757_v59 = vpop.f32.mrf.mxu3  ;;  %vm996_vm15 = vmor %vm994_vm14, %vm995_vm2  ;;  %v1016_v19 = vor.u32 1.1754944e-38, %v1015_v10  ;;  %vm1014_vm5 = vcmp.eq.f32.partialorder %v1013_v13, 8.507059e+37 }
 0x285   :  { %v991_v60 = vsub.f32 1.0, %v990_v57  ;;  %v758_v61 = vadd.f32 %v1817_v45, %v757_v59 }
 0x287   :  { %v1461_v63 = vpop.eup %1460  ;;  %v992_v0 = vmul.f32 %v1459_v55, %v991_v60  ;;  %v1401_v2 = vmul.f32 -1.442695, %v758_v61 }
 0x288   :  { %v1463_v3 = vpop.eup %1462  ;;  %v882_v4 = vadd.f32 1.0, %v1461_v63 }
 0x289   :  { %v993_v5 = vadd.f32 %v1459_v55, %v992_v0  ;;  %v1005_v6 = vmul.f32 %v1463_v3, %v881_v53  ;;  %1464 = vpow2.f32 %v1401_v2  ;;  %vm1010_vm1 = vweird.f32 %v1463_v3 }
 0x28a   :  { %1466 = vrcp.f32 %v882_v4  ;;  %vm1011_vm4 = vmor %vm1009_vm3, %vm1010_vm1  ;;  %v1030_v25 = vand.u32 2147483648, %v882_v4  ;;  %v1028_v27 = vand.u32 2147483647, %v882_v4  ;;  %vm1024_vm8 = vweird.f32 %v882_v4 }
 0x28b   :  { %v997_v7 = vsel %vm996_vm15, %v1459_v55, %v993_v5  ;;  %v1006_v8 = vsub.f32 1.0, %v1005_v6 }
 0x28c   :  { %v1002_v9 = vsel %vm999_vm0, %v1001_v31, %v997_v7  ;;  %v760_v11 = vpop.f32.mrf.mxu3  ;;  %v1031_v34 = vor.u32 1.1754944e-38, %v1030_v25  ;;  %vm1029_vm10 = vcmp.eq.f32.partialorder %v1028_v27, 8.507059e+37 }
 0x28d   :  { %1281 = vst.msk [vmem:[%s1965_s9 + $0x30] sm:$0xff] %vm1274_vm6, %v1002_v9  ;;  %v1007_v12 = vmul.f32 %v1463_v3, %v1006_v8  ;;  %v761_v14 = vadd.f32 %v1817_v45, %v760_v11 }
 0x28f   :  { %v1465_v15 = vpop.eup %1464  ;;  %v1008_v16 = vadd.f32 %v1463_v3, %v1007_v12  ;;  %v1402_v17 = vmul.f32 -1.442695, %v761_v14 }
 0x290   :  { %v1467_v18 = vpop.eup %1466  ;;  %v883_v20 = vadd.f32 1.0, %v1465_v15 }
 0x291   :  { %v1012_v21 = vsel %vm1011_vm4, %v1463_v3, %v1008_v16  ;;  %v1020_v22 = vmul.f32 %v1467_v18, %v882_v4  ;;  %1468 = vpow2.f32 %v1402_v17  ;;  %vm1025_vm7 = vweird.f32 %v1467_v18 }
 0x292   :  { %v1017_v23 = vsel %vm1014_vm5, %v1016_v19, %v1012_v21  ;;  %1470 = vrcp.f32 %v883_v20  ;;  %vm1026_vm9 = vmor %vm1024_vm8, %vm1025_vm7  ;;  %v1045_v40 = vand.u32 2147483648, %v883_v20  ;;  %v1043_v43 = vand.u32 2147483647, %v883_v20 }
 0x293   :  { %1282 = vst.msk [vmem:[%s1965_s9 + $0x38] sm:$0xff] %vm1274_vm6, %v1017_v23  ;;  %v1021_v24 = vsub.f32 1.0, %v1020_v22  ;;  %vm1039_vm12 = vweird.f32 %v883_v20 }
 0x294   :  { %v762_v58 = vpop.f32.mrf.mxu3  ;;  %v1046_v50 = vor.u32 1.1754944e-38, %v1045_v40  ;;  %vm1044_vm2 = vcmp.eq.f32.partialorder %v1043_v43, 8.507059e+37 }
 0x295   :  { %v1022_v26 = vmul.f32 %v1467_v18, %v1021_v24  ;;  %v763_v28 = vadd.f32 %v1817_v45, %v762_v58 }
 0x297   :  { %v1469_v29 = vpop.eup %1468  ;;  %v1023_v30 = vadd.f32 %v1467_v18, %v1022_v26  ;;  %v1403_v32 = vmul.f32 -1.442695, %v763_v28 }
 0x298   :  { %v1471_v33 = vpop.eup %1470  ;;  %v884_v35 = vadd.f32 1.0, %v1469_v29 }
 0x299   :  { %v1027_v36 = vsel %vm1026_vm9, %v1467_v18, %v1023_v30  ;;  %v1035_v37 = vmul.f32 %v1471_v33, %v883_v20  ;;  %1472 = vpow2.f32 %v1403_v32  ;;  %vm1040_vm11 = vweird.f32 %v1471_v33 }
 0x29a   :  { %v1032_v38 = vsel %vm1029_vm10, %v1031_v34, %v1027_v36  ;;  %1474 = vrcp.f32 %v884_v35  ;;  %vm1041_vm13 = vmor %vm1039_vm12, %vm1040_vm11  ;;  %v1060_v56 = vand.u32 2147483648, %v884_v35  ;;  %v1058_v60 = vand.u32 2147483647, %v884_v35 }
 0x29b   :  { %1283 = vst.msk [vmem:[%s1965_s9 + $0x40] sm:$0xff] %vm1274_vm6, %v1032_v38  ;;  %v1036_v39 = vsub.f32 1.0, %v1035_v37  ;;  %vm1054_vm15 = vweird.f32 %v884_v35 }
 0x29c   :  { %v765_v41 = vpop.f32.mrf.mxu3  ;;  %v1061_v2 = vor.u32 1.1754944e-38, %v1060_v56  ;;  %vm1059_vm1 = vcmp.eq.f32.partialorder %v1058_v60, 8.507059e+37 }
 0x29d   :  { %v1037_v42 = vmul.f32 %v1471_v33, %v1036_v39  ;;  %v766_v44 = vadd.f32 %v1817_v45, %v765_v41 }
 0x29f   :  { %v1473_v46 = vpop.eup %1472  ;;  %v1038_v47 = vadd.f32 %v1471_v33, %v1037_v42  ;;  %v1404_v48 = vmul.f32 -1.442695, %v766_v44 }
 0x2a0   :  { %v1475_v49 = vpop.eup %1474  ;;  %v885_v51 = vadd.f32 1.0, %v1473_v46 }
 0x2a1   :  { %v1042_v52 = vsel %vm1041_vm13, %v1471_v33, %v1038_v47  ;;  %v1050_v53 = vmul.f32 %v1475_v49, %v884_v35  ;;  %1476 = vpow2.f32 %v1404_v48  ;;  %vm1055_vm14 = vweird.f32 %v1475_v49 }
 0x2a2   :  { %v1047_v54 = vsel %vm1044_vm2, %v1046_v50, %v1042_v52  ;;  %1478 = vrcp.f32 %v885_v51  ;;  %vm1056_vm0 = vmor %vm1054_vm15, %vm1055_vm14  ;;  %v1075_v7 = vand.u32 2147483648, %v885_v51  ;;  %v1073_v10 = vand.u32 2147483647, %v885_v51 }
 0x2a3   :  { %1284 = vst.msk [vmem:[%s1965_s9 + $0x48] sm:$0xff] %vm1274_vm6, %v1047_v54  ;;  %v1051_v55 = vsub.f32 1.0, %v1050_v53  ;;  %vm1069_vm4 = vweird.f32 %v885_v51 }
 0x2a4   :  { %v767_v57 = vpop.f32.mrf.mxu3  ;;  %v1076_v16 = vor.u32 1.1754944e-38, %v1075_v7  ;;  %vm1074_vm7 = vcmp.eq.f32.partialorder %v1073_v10, 8.507059e+37 }
 0x2a5   :  { %v1052_v59 = vmul.f32 %v1475_v49, %v1051_v55  ;;  %v768_v61 = vadd.f32 %v1817_v45, %v767_v57 }
 0x2a7   :  { %v1477_v62 = vpop.eup %1476  ;;  %v1053_v63 = vadd.f32 %v1475_v49, %v1052_v59  ;;  %v1405_v0 = vmul.f32 -1.442695, %v768_v61 }
 0x2a8   :  { %v1479_v1 = vpop.eup %1478  ;;  %v886_v3 = vadd.f32 1.0, %v1477_v62 }
 0x2a9   :  { %v1057_v4 = vsel %vm1056_vm0, %v1475_v49, %v1053_v63  ;;  %v1065_v5 = vmul.f32 %v1479_v1, %v885_v51  ;;  %1480 = vpow2.f32 %v1405_v0  ;;  %vm1070_vm3 = vweird.f32 %v1479_v1 }
 0x2aa   :  { %v1062_v6 = vsel %vm1059_vm1, %v1061_v2, %v1057_v4  ;;  %1482 = vrcp.f32 %v886_v3  ;;  %vm1071_vm5 = vmor %vm1069_vm4, %vm1070_vm3  ;;  %v1090_v22 = vand.u32 2147483648, %v886_v3  ;;  %v1088_v25 = vand.u32 2147483647, %v886_v3 }
 0x2ab   :  { %1285 = vst.msk [vmem:[%s1965_s9 + $0x50] sm:$0xff] %vm1274_vm6, %v1062_v6  ;;  %v1066_v31 = vsub.f32 1.0, %v1065_v5  ;;  %vm1084_vm9 = vweird.f32 %v886_v3 }
 0x2ac   :  { %v770_v8 = vpop.f32.mrf.mxu3  ;;  %v1091_v30 = vor.u32 1.1754944e-38, %v1090_v22  ;;  %vm1089_vm11 = vcmp.eq.f32.partialorder %v1088_v25, 8.507059e+37 }
 0x2ad   :  { %v1067_v9 = vmul.f32 %v1479_v1, %v1066_v31  ;;  %v771_v11 = vadd.f32 %v1817_v45, %v770_v8 }
 0x2af   :  { %v1481_v12 = vpop.eup %1480  ;;  %v1068_v13 = vadd.f32 %v1479_v1, %v1067_v9  ;;  %v1406_v14 = vmul.f32 -1.442695, %v771_v11 }
 0x2b0   :  { %v1483_v15 = vpop.eup %1482  ;;  %v887_v17 = vadd.f32 1.0, %v1481_v12 }
 0x2b1   :  { %v1072_v18 = vsel %vm1071_vm5, %v1479_v1, %v1068_v13  ;;  %v1080_v19 = vmul.f32 %v1483_v15, %v886_v3  ;;  %1484 = vpow2.f32 %v1406_v14  ;;  %vm1085_vm8 = vweird.f32 %v1483_v15 }
 0x2b2   :  { %v1077_v20 = vsel %vm1074_vm7, %v1076_v16, %v1072_v18  ;;  %1486 = vrcp.f32 %v887_v17  ;;  %vm1086_vm10 = vmor %vm1084_vm9, %vm1085_vm8  ;;  %v1105_v37 = vand.u32 2147483648, %v887_v17  ;;  %v1103_v40 = vand.u32 2147483647, %v887_v17 }
 0x2b3   :  { %1286 = vst.msk [vmem:[%s1965_s9 + $0x58] sm:$0xff] %vm1274_vm6, %v1077_v20  ;;  %v1081_v21 = vsub.f32 1.0, %v1080_v19  ;;  %vm1099_vm13 = vweird.f32 %v887_v17 }
 0x2b4   :  { %v772_v23 = vpop.f32.mrf.mxu3  ;;  %v1106_v47 = vor.u32 1.1754944e-38, %v1105_v37  ;;  %vm1104_vm14 = vcmp.eq.f32.partialorder %v1103_v40, 8.507059e+37 }
 0x2b5   :  { %v1082_v24 = vmul.f32 %v1483_v15, %v1081_v21  ;;  %v773_v58 = vadd.f32 %v1817_v45, %v772_v23 }
 0x2b7   :  { %v1485_v26 = vpop.eup %1484  ;;  %v1083_v27 = vadd.f32 %v1483_v15, %v1082_v24  ;;  %v1407_v28 = vmul.f32 -1.442695, %v773_v58 }
 0x2b8   :  { %v1487_v29 = vpop.eup %1486  ;;  %v888_v32 = vadd.f32 1.0, %v1485_v26 }
 0x2b9   :  { %v1087_v33 = vsel %vm1086_vm10, %v1483_v15, %v1083_v27  ;;  %v1095_v34 = vmul.f32 %v1487_v29, %v887_v17  ;;  %1488 = vpow2.f32 %v1407_v28  ;;  %vm1100_vm12 = vweird.f32 %v1487_v29 }
 0x2ba   :  { %v1092_v35 = vsel %vm1089_vm11, %v1091_v30, %v1087_v33  ;;  %1490 = vrcp.f32 %v888_v32  ;;  %vm1101_vm2 = vmor %vm1099_vm13, %vm1100_vm12  ;;  %v1120_v53 = vand.u32 2147483648, %v888_v32  ;;  %v1118_v56 = vand.u32 2147483647, %v888_v32 }
 0x2bb   :  { %1287 = vst.msk [vmem:[%s1965_s9 + $0x60] sm:$0xff] %vm1274_vm6, %v1092_v35  ;;  %v1096_v36 = vsub.f32 1.0, %v1095_v34  ;;  %vm1114_vm0 = vweird.f32 %v888_v32 }
 0x2bc   :  { %v775_v38 = vpop.f32.mrf.mxu3  ;;  %v1121_v63 = vor.u32 1.1754944e-38, %v1120_v53  ;;  %vm1119_vm3 = vcmp.eq.f32.partialorder %v1118_v56, 8.507059e+37 }
 0x2bd   :  { %v1097_v39 = vmul.f32 %v1487_v29, %v1096_v36  ;;  %v776_v41 = vadd.f32 %v1817_v45, %v775_v38 }
 0x2bf   :  { %v1489_v42 = vpop.eup %1488  ;;  %v1098_v43 = vadd.f32 %v1487_v29, %v1097_v39  ;;  %v1408_v44 = vmul.f32 -1.442695, %v776_v41 }
 0x2c0   :  { %v1491_v46 = vpop.eup %1490  ;;  %v889_v48 = vadd.f32 1.0, %v1489_v42 }
 0x2c1   :  { %v1102_v49 = vsel %vm1101_vm2, %v1487_v29, %v1098_v43  ;;  %v1110_v50 = vmul.f32 %v1491_v46, %v888_v32  ;;  %1492 = vpow2.f32 %v1408_v44  ;;  %vm1115_vm15 = vweird.f32 %v1491_v46 }
 0x2c2   :  { %v1107_v51 = vsel %vm1104_vm14, %v1106_v47, %v1102_v49  ;;  %1494 = vrcp.f32 %v889_v48  ;;  %vm1116_vm1 = vmor %vm1114_vm0, %vm1115_vm15  ;;  %v1135_v5 = vand.u32 2147483648, %v889_v48  ;;  %v1133_v7 = vand.u32 2147483647, %v889_v48 }
 0x2c3   :  { %1288 = vst.msk [vmem:[%s1965_s9 + $0x68] sm:$0xff] %vm1274_vm6, %v1107_v51  ;;  %v1111_v52 = vsub.f32 1.0, %v1110_v50  ;;  %vm1129_vm5 = vweird.f32 %v889_v48 }
 0x2c4   :  { %v777_v54 = vpop.f32.mrf.mxu3  ;;  %v1136_v13 = vor.u32 1.1754944e-38, %v1135_v5  ;;  %vm1134_vm8 = vcmp.eq.f32.partialorder %v1133_v7, 8.507059e+37 }
 0x2c5   :  { %v1112_v55 = vmul.f32 %v1491_v46, %v1111_v52  ;;  %v778_v57 = vadd.f32 %v1817_v45, %v777_v54 }
 0x2c7   :  { %v1493_v59 = vpop.eup %1492  ;;  %v1113_v60 = vadd.f32 %v1491_v46, %v1112_v55  ;;  %v1409_v61 = vmul.f32 -1.442695, %v778_v57 }
 0x2c8   :  { %v1495_v62 = vpop.eup %1494  ;;  %v890_v0 = vadd.f32 1.0, %v1493_v59 }
 0x2c9   :  { %v1117_v1 = vsel %vm1116_vm1, %v1491_v46, %v1113_v60  ;;  %v1125_v2 = vmul.f32 %v1495_v62, %v889_v48  ;;  %1496 = vpow2.f32 %v1409_v61  ;;  %vm1130_vm4 = vweird.f32 %v1495_v62 }
 0x2ca   :  { %v1122_v3 = vsel %vm1119_vm3, %v1121_v63, %v1117_v1  ;;  %1498 = vrcp.f32 %v890_v0  ;;  %vm1131_vm7 = vmor %vm1129_vm5, %vm1130_vm4  ;;  %v1150_v19 = vand.u32 2147483648, %v890_v0  ;;  %v1148_v22 = vand.u32 2147483647, %v890_v0 }
 0x2cb   :  { %1289 = vst.msk [vmem:[%s1965_s9 + $0x70] sm:$0xff] %vm1274_vm6, %v1122_v3  ;;  %v1126_v4 = vsub.f32 1.0, %v1125_v2  ;;  %vm1144_vm10 = vweird.f32 %v890_v0 }
 0x2cc   :  { %v780_v6 = vpop.f32.mrf.mxu3  ;;  %v1151_v27 = vor.u32 1.1754944e-38, %v1150_v19  ;;  %vm1149_vm12 = vcmp.eq.f32.partialorder %v1148_v22, 8.507059e+37 }
 0x2cd   :  { %v1127_v31 = vmul.f32 %v1495_v62, %v1126_v4  ;;  %v781_v8 = vadd.f32 %v1817_v45, %v780_v6 }
 0x2cf   :  { %v1497_v9 = vpop.eup %1496  ;;  %v1128_v10 = vadd.f32 %v1495_v62, %v1127_v31  ;;  %v1410_v11 = vmul.f32 -1.442695, %v781_v8 }
 0x2d0   :  { %v1499_v12 = vpop.eup %1498  ;;  %v891_v14 = vadd.f32 1.0, %v1497_v9 }
 0x2d1   :  { %v1132_v15 = vsel %vm1131_vm7, %v1495_v62, %v1128_v10  ;;  %v1140_v16 = vmul.f32 %v1499_v12, %v890_v0  ;;  %1500 = vpow2.f32 %v1410_v11  ;;  %vm1145_vm9 = vweird.f32 %v1499_v12 }
 0x2d2   :  { %v1137_v17 = vsel %vm1134_vm8, %v1136_v13, %v1132_v15  ;;  %1502 = vrcp.f32 %v891_v14  ;;  %vm1146_vm11 = vmor %vm1144_vm10, %vm1145_vm9  ;;  %v1165_v34 = vand.u32 2147483648, %v891_v14  ;;  %v1163_v37 = vand.u32 2147483647, %v891_v14 }
 0x2d3   :  { %1290 = vst.msk [vmem:[%s1965_s9 + $0x78] sm:$0xff] %vm1274_vm6, %v1137_v17  ;;  %v1141_v18 = vsub.f32 1.0, %v1140_v16  ;;  %vm1159_vm2 = vweird.f32 %v891_v14 }
 0x2d4   :  { %v782_v20 = vpop.f32.mrf.mxu3  ;;  %v1166_v43 = vor.u32 1.1754944e-38, %v1165_v34  ;;  %vm1164_vm15 = vcmp.eq.f32.partialorder %v1163_v37, 8.507059e+37 }
 0x2d5   :  { %v1142_v21 = vmul.f32 %v1499_v12, %v1141_v18  ;;  %v783_v23 = vadd.f32 %v1817_v45, %v782_v20 }
 0x2d7   :  { %v1501_v24 = vpop.eup %1500  ;;  %v1143_v25 = vadd.f32 %v1499_v12, %v1142_v21  ;;  %v1411_v58 = vmul.f32 -1.442695, %v783_v23 }
 0x2d8   :  { %v1503_v26 = vpop.eup %1502  ;;  %v892_v28 = vadd.f32 1.0, %v1501_v24  ;;  %v1530_v24 = vld [vmem:[%s1964_s8] ss:$0 sm:$0xff] }
 0x2d9   :  { %v1147_v29 = vsel %vm1146_vm11, %v1499_v12, %v1143_v25  ;;  %v1155_v30 = vmul.f32 %v1503_v26, %v891_v14  ;;  %1504 = vpow2.f32 %v1411_v58  ;;  %vm1160_vm13 = vweird.f32 %v1503_v26 }
 0x2da   :  { %v1152_v32 = vsel %vm1149_vm12, %v1151_v27, %v1147_v29  ;;  %1506 = vrcp.f32 %v892_v28  ;;  %vm1161_vm14 = vmor %vm1159_vm2, %vm1160_vm13  ;;  %v1180_v50 = vand.u32 2147483648, %v892_v28  ;;  %v1178_v53 = vand.u32 2147483647, %v892_v28 }
 0x2db   :  { %1291 = vst.msk [vmem:[%s1965_s9 + $0x80] sm:$0xff] %vm1274_vm6, %v1152_v32  ;;  %v1156_v33 = vsub.f32 1.0, %v1155_v30  ;;  %vm1174_vm1 = vweird.f32 %v892_v28 }
 0x2dc   :  { %v785_v35 = vpop.f32.mrf.mxu3  ;;  %v1181_v60 = vor.u32 1.1754944e-38, %v1180_v50  ;;  %vm1179_vm4 = vcmp.eq.f32.partialorder %v1178_v53, 8.507059e+37 }
 0x2dd   :  { %v1157_v36 = vmul.f32 %v1503_v26, %v1156_v33  ;;  %v786_v38 = vadd.f32 %v1817_v45, %v785_v35 }
 0x2df   :  { %v1505_v39 = vpop.eup %1504  ;;  %v1158_v40 = vadd.f32 %v1503_v26, %v1157_v36  ;;  %v1412_v41 = vmul.f32 -1.442695, %v786_v38 }
 0x2e0   :  { %v1507_v42 = vpop.eup %1506  ;;  %v893_v44 = vadd.f32 1.0, %v1505_v39 }
 0x2e1   :  { %v1162_v46 = vsel %vm1161_vm14, %v1503_v26, %v1158_v40  ;;  %v1170_v47 = vmul.f32 %v1507_v42, %v892_v28  ;;  %1508 = vpow2.f32 %v1412_v41  ;;  %vm1175_vm0 = vweird.f32 %v1507_v42 }
 0x2e2   :  { %v1167_v48 = vsel %vm1164_vm15, %v1166_v43, %v1162_v46  ;;  %1510 = vrcp.f32 %v893_v44  ;;  %vm1176_vm3 = vmor %vm1174_vm1, %vm1175_vm0  ;;  %v1195_v2 = vand.u32 2147483648, %v893_v44  ;;  %v1193_v4 = vand.u32 2147483647, %v893_v44 }
 0x2e3   :  { %1292 = vst.msk [vmem:[%s1965_s9 + $0x88] sm:$0xff] %vm1274_vm6, %v1167_v48  ;;  %v1171_v49 = vsub.f32 1.0, %v1170_v47  ;;  %vm1189_vm7 = vweird.f32 %v893_v44 }
 0x2e4   :  { %v787_v51 = vpop.f32.mrf.mxu3  ;;  %v1196_v7 = vor.u32 1.1754944e-38, %v1195_v2  ;;  %vm1194_vm9 = vcmp.eq.f32.partialorder %v1193_v4, 8.507059e+37 }
 0x2e5   :  { %v1172_v52 = vmul.f32 %v1507_v42, %v1171_v49  ;;  %v788_v54 = vadd.f32 %v1817_v45, %v787_v51 }
 0x2e7   :  { %v1509_v55 = vpop.eup %1508  ;;  %v1173_v56 = vadd.f32 %v1507_v42, %v1172_v52  ;;  %v1413_v57 = vmul.f32 -1.442695, %v788_v54 }
 0x2e8   :  { %v1511_v59 = vpop.eup %1510  ;;  %v894_v61 = vadd.f32 1.0, %v1509_v55 }
 0x2e9   :  { %v1177_v62 = vsel %vm1176_vm3, %v1507_v42, %v1173_v56  ;;  %v1185_v63 = vmul.f32 %v1511_v59, %v893_v44  ;;  %1512 = vpow2.f32 %v1413_v57  ;;  %vm1190_vm5 = vweird.f32 %v1511_v59 }
 0x2ea   :  { %v1182_v0 = vsel %vm1179_vm4, %v1181_v60, %v1177_v62  ;;  %1514 = vrcp.f32 %v894_v61  ;;  %vm1191_vm8 = vmor %vm1189_vm7, %vm1190_vm5  ;;  %v1210_v16 = vand.u32 2147483648, %v894_v61  ;;  %v1208_v18 = vand.u32 2147483647, %v894_v61 }
 0x2eb   :  { %1293 = vst.msk [vmem:[%s1965_s9 + $0x90] sm:$0xff] %vm1274_vm6, %v1182_v0  ;;  %v1186_v1 = vsub.f32 1.0, %v1185_v63  ;;  %vm1204_vm11 = vweird.f32 %v894_v61 }
 0x2ec   :  { %v790_v9 = vpop.f32.mrf.mxu3  ;;  %v1211_v21 = vor.u32 1.1754944e-38, %v1210_v16  ;;  %vm1209_vm13 = vcmp.eq.f32.partialorder %v1208_v18, 8.507059e+37 }
 0x2ed   :  { %v1187_v3 = vmul.f32 %v1511_v59, %v1186_v1  ;;  %v791_v12 = vadd.f32 %v1817_v45, %v790_v9 }
 0x2ef   :  { %v1513_v5 = vpop.eup %1512  ;;  %v1188_v6 = vadd.f32 %v1511_v59, %v1187_v3  ;;  %v1414_v15 = vmul.f32 -1.442695, %v791_v12 }
 0x2f0   :  { %v1515_v31 = vpop.eup %1514  ;;  %v895_v8 = vadd.f32 1.0, %v1513_v5 }
 0x2f1   :  { %v1192_v10 = vsel %vm1191_vm8, %v1511_v59, %v1188_v6  ;;  %v1200_v11 = vmul.f32 %v1515_v31, %v894_v61  ;;  %vm1205_vm10 = vweird.f32 %v1515_v31 }
 0x2f2   :  { %v1197_v13 = vsel %vm1194_vm9, %v1196_v7, %v1192_v10  ;;  %1516 = vrcp.f32 %v895_v8  ;;  %vm1206_vm12 = vmor %vm1204_vm11, %vm1205_vm10  ;;  %v1225_v29 = vand.u32 2147483648, %v895_v8  ;;  %v1223_v33 = vand.u32 2147483647, %v895_v8 }
 0x2f3   :  { %1294 = vst.msk [vmem:[%s1965_s9 + $0x98] sm:$0xff] %vm1274_vm6, %v1197_v13  ;;  %v1201_v14 = vsub.f32 1.0, %v1200_v11  ;;  %1518 = vpow2.f32 %v1414_v15  ;;  %vm1219_vm14 = vweird.f32 %v895_v8 }
 0x2f4   :  { %v792_v45 = vpop.f32.mrf.mxu3  ;;  %v1226_v35 = vor.u32 1.1754944e-38, %v1225_v29  ;;  %vm1224_vm0 = vcmp.eq.f32.partialorder %v1223_v33, 8.507059e+37 }
 0x2f5   :  { %v1202_v17 = vmul.f32 %v1515_v31, %v1201_v14  ;;  %v793_v25 = vadd.f32 %v1530_v24, %v792_v45 }
 0x2f7   :  { %v1203_v19 = vadd.f32 %v1515_v31, %v1202_v17  ;;  %v1415_v28 = vmul.f32 -1.442695, %v793_v25 }
 0x2f8   :  { %v1517_v20 = vpop.eup %1516 }
 0x2f9   :  { %v1207_v22 = vsel %vm1206_vm12, %v1515_v31, %v1203_v19  ;;  %v1215_v23 = vmul.f32 %v1517_v20, %v895_v8  ;;  %v1519_v26 = vpop.eup %1518  ;;  %vm1220_vm2 = vweird.f32 %v1517_v20  ;;  %1520 = vpow2.f32 %v1415_v28 }
 0x2fa   :  { %v1212_v58 = vsel %vm1209_vm13, %v1211_v21, %v1207_v22  ;;  %v896_v30 = vadd.f32 1.0, %v1519_v26  ;;  %vm1221_vm15 = vmor %vm1219_vm14, %vm1220_vm2 }
 0x2fb   :  { %1295 = vst.msk [vmem:[%s1965_s9 + $0xa0] sm:$0xff] %vm1274_vm6, %v1212_v58  ;;  %v1216_v27 = vsub.f32 1.0, %v1215_v23 }
 0x2fc   :  { %1522 = vrcp.f32 %v896_v30  ;;  %v795_v36 = vpop.f32.mrf.mxu3  ;;  %v1240_v47 = vand.u32 2147483648, %v896_v30  ;;  %v1238_v50 = vand.u32 2147483647, %v896_v30  ;;  %vm1234_vm3 = vweird.f32 %v896_v30 }
 0x2fd   :  { %v1217_v32 = vmul.f32 %v1517_v20, %v1216_v27  ;;  %v796_v38 = vadd.f32 %v1530_v24, %v795_v36 }
 0x2fe   :  { %v1241_v54 = vor.u32 1.1754944e-38, %v1240_v47  ;;  %vm1239_vm5 = vcmp.eq.f32.partialorder %v1238_v50, 8.507059e+37 }
 0x2ff   :  { %v1218_v34 = vadd.f32 %v1517_v20, %v1217_v32  ;;  %v1521_v40 = vpop.eup %1520  ;;  %v1416_v41 = vmul.f32 -1.442695, %v796_v38 }
 0x300   :  { %v897_v43 = vadd.f32 1.0, %v1521_v40 }
 0x301   :  { %v1222_v37 = vsel %vm1221_vm15, %v1517_v20, %v1218_v34  ;;  %1524 = vpow2.f32 %v1416_v41 }
 0x302   :  { %v1227_v39 = vsel %vm1224_vm0, %v1226_v35, %v1222_v37  ;;  %v1523_v42 = vpop.eup %1522  ;;  %1526 = vrcp.f32 %v897_v43  ;;  %v1255_v61 = vand.u32 2147483648, %v897_v43  ;;  %v1253_v63 = vand.u32 2147483647, %v897_v43 }
 0x303   :  { %1296 = vst.msk [vmem:[%s1965_s9 + $0xa8] sm:$0xff] %vm1274_vm6, %v1227_v39  ;;  %v1230_v44 = vmul.f32 %v1523_v42, %v896_v30  ;;  %vm1235_vm1 = vweird.f32 %v1523_v42  ;;  %vm1249_vm8 = vweird.f32 %v897_v43 }
 0x304   :  { %v797_v48 = vpop.f32.mrf.mxu3  ;;  %vm1236_vm4 = vmor %vm1234_vm3, %vm1235_vm1  ;;  %v1256_v2 = vor.u32 1.1754944e-38, %v1255_v61  ;;  %vm1254_vm10 = vcmp.eq.f32.partialorder %v1253_v63, 8.507059e+37 }
 0x305   :  { %v1231_v46 = vsub.f32 1.0, %v1230_v44 }
 0x307   :  { %v1232_v49 = vmul.f32 %v1523_v42, %v1231_v46  ;;  %v1525_v51 = vpop.eup %1524 }
 0x308   :  { %v1527_v53 = vpop.eup %1526  ;;  %v898_v55 = vadd.f32 1.0, %v1525_v51 }
 0x309   :  { %v1233_v52 = vadd.f32 %v1523_v42, %v1232_v49  ;;  %v1245_v57 = vmul.f32 %v1527_v53, %v897_v43  ;;  %vm1250_vm7 = vweird.f32 %v1527_v53 }
 0x30a   :  { %1528 = vrcp.f32 %v898_v55  ;;  %vm1251_vm9 = vmor %vm1249_vm8, %vm1250_vm7  ;;  %v1270_v31 = vand.u32 2147483648, %v898_v55  ;;  %v1268_v8 = vand.u32 2147483647, %v898_v55  ;;  %vm1264_vm12 = vweird.f32 %v898_v55 }
 0x30b   :  { %v1237_v56 = vsel %vm1236_vm4, %v1523_v42, %v1233_v52  ;;  %v1246_v60 = vsub.f32 1.0, %v1245_v57 }
 0x30c   :  { %v1242_v59 = vsel %vm1239_vm5, %v1241_v54, %v1237_v56  ;;  %v1271_v10 = vor.u32 1.1754944e-38, %v1270_v31  ;;  %vm1269_vm2 = vcmp.eq.f32.partialorder %v1268_v8, 8.507059e+37 }
 0x30d   :  { %1297 = vst.msk [vmem:[%s1965_s9 + $0xb0] sm:$0xff] %vm1274_vm6, %v1242_v59  ;;  %v1247_v62 = vmul.f32 %v1527_v53, %v1246_v60 }
 0x30f   :  { %v1248_v0 = vadd.f32 %v1527_v53, %v1247_v62 }
 0x310   :  { %v1529_v1 = vpop.eup %1528 }
 0x311   :  { %v1252_v3 = vsel %vm1251_vm9, %v1527_v53, %v1248_v0  ;;  %v1260_v4 = vmul.f32 %v1529_v1, %v898_v55  ;;  %vm1265_vm11 = vweird.f32 %v1529_v1 }
 0x312   :  { %v1257_v5 = vsel %vm1254_vm10, %v1256_v2, %v1252_v3  ;;  %vm1266_vm13 = vmor %vm1264_vm12, %vm1265_vm11 }
 0x313   :  { %1298 = vst.msk [vmem:[%s1965_s9 + $0xb8] sm:$0xff] %vm1274_vm6, %v1257_v5  ;;  %v1261_v6 = vsub.f32 1.0, %v1260_v4 }
 0x315   :  { %v1262_v7 = vmul.f32 %v1529_v1, %v1261_v6 }
 0x317   :  { %v1263_v9 = vadd.f32 %v1529_v1, %v1262_v7 }
 0x319   :  { %v1267_v11 = vsel %vm1266_vm13, %v1529_v1, %v1263_v9 }
 0x31a   :  { %v1272_v12 = vsel %vm1269_vm2, %v1271_v10, %v1267_v11 }
 0x31b   :  { %1299 = vst.msk [vmem:[%s1965_s9 + $0xc0] sm:$0xff] %vm1274_vm6, %v1272_v12 }

</bundles_post_ra>
